<compile_context>
chip_gen: v7x
topology: tpu7x:2x2x1
jax: 0.10.0
libtpu: 0.0.40
codegen_flags: <defaults>
</compile_context>

<pallas_src>
import math
import functools

import jax
import jax.numpy as jnp
from jax import lax
from jax.experimental import pallas as pl
from jax.experimental.pallas import tpu as pltpu  # noqa: F401


# ----------------------------- config ---------------------------------------
class Config:
    vocab_size = 64
    context_len = 16
    d_model = 32
    num_heads = 4
    num_layers = 2
    dropout = 0.0            # dropout == 0 -> identity (eval semantics)
    bias = True
    positional_encoding = "sinusoidal"


# --------------------------- kernel helpers ----------------------------------
def _layernorm(x, w, b, eps=1e-5):
    # x: (M, D), w/b: (1, D) -- all f32
    mu = jnp.mean(x, axis=-1, keepdims=True)
    xc = x - mu
    var = jnp.mean(xc * xc, axis=-1, keepdims=True)
    return xc * lax.rsqrt(var + eps) * w + b


def _gelu(x):
    # TODO(synk): PyTorch nn.GELU() default is the exact erf-based GELU; erf lowering
    # on Mosaic is uncertain, so the tanh approximation is used here.
    c = math.sqrt(2.0 / math.pi)
    return 0.5 * x * (1.0 + jnp.tanh(c * (x + 0.044715 * x * x * x)))


# --------------------------- fused forward kernel ----------------------------
def fwd_kernel(idx_ref, pos_ref, bias_ref, small_ref, wte_ref, wte_t_ref,
               wqkv_ref, wproj_ref, wfc_ref, wfcp_ref, o_ref,
               *, n_layer, n_head):
    BT = idx_ref.shape[0]
    V, D = wte_ref.shape
    hd = D // n_head

    # packed tiny params: per layer rows [ln1_w, ln1_b, b_qkv, b_proj, ln2_w,
    # ln2_b, b_fc, b_fcp], then [ln_f_w, ln_f_b]; each row padded to 4*D lanes.
    small = small_ref[...]                                   # (8L+2, 4D) f32

    # ---- token embedding gather as an exact one-hot MXU matmul (bf16 operands,
    # f32 accumulation) + sinusoidal positional add
    col_ids = lax.broadcasted_iota(jnp.int32, (BT, V), 1)
    onehot = (col_ids == idx_ref[...]).astype(jnp.bfloat16)
    x = jnp.dot(onehot, wte_ref[...], preferred_element_type=jnp.float32) + pos_ref[...]

    # additive block-diagonal causal bias, tiled per head: (H*BT, BT), f32
    attn_bias = bias_ref[...]

    for l in range(n_layer):                                 # static unroll, L=2
        r = 8 * l
        ln1w, ln1b = small[r + 0:r + 1, :D], small[r + 1:r + 2, :D]
        bqkv       = small[r + 2:r + 3, :3 * D]
        bproj      = small[r + 3:r + 4, :D]
        ln2w, ln2b = small[r + 4:r + 5, :D], small[r + 5:r + 6, :D]
        bfc        = small[r + 6:r + 7, :4 * D]
        bfcp       = small[r + 7:r + 8, :D]

        # ---------------- causal self-attention ----------------
        xn = _layernorm(x, ln1w, ln1b)
        qkv = jnp.dot(xn.astype(jnp.bfloat16), wqkv_ref[l],
                      preferred_element_type=jnp.float32) + bqkv      # (BT, 3D) f32
        qkv_bf = qkv.astype(jnp.bfloat16)                             # MXU operands

        # per-head scores; contraction handles the K "transpose" (no kh.T relayout).
        # 1/sqrt(hd) is already folded into the Q columns of w_qkv / b_qkv.
        scores = []
        for h in range(n_head):                                        # static unroll
            qh = qkv_bf[:, h * hd:(h + 1) * hd]
            kh = qkv_bf[:, D + h * hd:D + (h + 1) * hd]
            scores.append(lax.dot_general(qh, kh, (((1,), (1,)), ((), ())),
                                          preferred_element_type=jnp.float32))

        # one batched softmax for all heads (sublane-stacked); mask / max-sub /
        # exp stay in f32 so the -1e30 bias never touches bf16.
        att = jnp.concatenate(scores, axis=0)                          # (H*BT, BT)
        att = att + attn_bias
        att = att - jnp.max(att, axis=-1, keepdims=True)
        e = jnp.exp(att)
        p = e * pl.reciprocal(jnp.sum(e, axis=-1, keepdims=True), approx=True)
        p_bf = p.astype(jnp.bfloat16)

        # per-head p @ v accumulated straight into the output projection via
        # static row-slices of w_proj (no lane concat of 8-wide head tiles).
        wproj_l = wproj_ref[l]                                         # (D, D) bf16
        y = jnp.zeros((BT, D), jnp.float32)
        for h in range(n_head):
            ph = p_bf[h * BT:(h + 1) * BT, :]                          # sublane slice
            vh = qkv_bf[:, 2 * D + h * hd:2 * D + (h + 1) * hd]
            yh = jnp.dot(ph, vh, preferred_element_type=jnp.float32)   # (BT, hd) f32
            y = y + jnp.dot(yh.astype(jnp.bfloat16),
                            wproj_l[h * hd:(h + 1) * hd, :],
                            preferred_element_type=jnp.float32)
        x = x + y + bproj                                              # residual 1

        # ---------------- MLP ----------------
        xn2 = _layernorm(x, ln2w, ln2b)
        hmid = _gelu(jnp.dot(xn2.astype(jnp.bfloat16), wfc_ref[l],
                             preferred_element_type=jnp.float32) + bfc)
        m = jnp.dot(hmid.astype(jnp.bfloat16), wfcp_ref[l],
                    preferred_element_type=jnp.float32) + bfcp
        x = x + m                                                      # residual 2

    # ---- final LayerNorm + tied lm_head (pre-transposed, lane-padded weight) ----
    lnf = 8 * n_layer
    xf = _layernorm(x, small[lnf:lnf + 1, :D], small[lnf + 1:lnf + 2, :D])
    o_ref[...] = jnp.dot(xf.astype(jnp.bfloat16), wte_t_ref[...],
                         preferred_element_type=jnp.float32)           # (BT, Vpad)


# --------------------------- parameter init (deterministic) ------------------
def init_params(key, cfg):
    D, V, L = cfg.d_model, cfg.vocab_size, cfg.num_layers
    std = 0.02
    proj_std = 0.02 / math.sqrt(2 * L)      # c_proj special init

    keys = jax.random.split(key, 1 + 4 * L)
    wte = std * jax.random.normal(keys[0], (V, D), jnp.float32)

    w_qkv, w_proj, w_fc, w_fcp = [], [], [], []
    for l in range(L):
        k0, k1, k2, k3 = keys[1 + 4 * l:1 + 4 * (l + 1)]
        w_qkv.append(std * jax.random.normal(k0, (D, 3 * D), jnp.float32))
        w_proj.append(proj_std * jax.random.normal(k1, (D, D), jnp.float32))
        w_fc.append(std * jax.random.normal(k2, (D, 4 * D), jnp.float32))
        w_fcp.append(proj_std * jax.random.normal(k3, (4 * D, D), jnp.float32))

    params = dict(
        wte=wte,
        ln1_w=jnp.ones((L, 1, D), jnp.float32), ln1_b=jnp.zeros((L, 1, D), jnp.float32),
        w_qkv=jnp.stack(w_qkv), b_qkv=jnp.zeros((L, 1, 3 * D), jnp.float32),
        w_proj=jnp.stack(w_proj), b_proj=jnp.zeros((L, 1, D), jnp.float32),
        ln2_w=jnp.ones((L, 1, D), jnp.float32), ln2_b=jnp.zeros((L, 1, D), jnp.float32),
        w_fc=jnp.stack(w_fc), b_fc=jnp.zeros((L, 1, 4 * D), jnp.float32),
        w_fcp=jnp.stack(w_fcp), b_fcp=jnp.zeros((L, 1, D), jnp.float32),
        ln_f_w=jnp.ones((1, D), jnp.float32), ln_f_b=jnp.zeros((1, D), jnp.float32),
    )

    # sinusoidal positional embedding table (context_len, D)
    position = jnp.arange(cfg.context_len, dtype=jnp.float32)[:, None]
    div_term = jnp.exp(jnp.arange(0, D, 2, dtype=jnp.float32) * (-math.log(10000.0) / D))
    pe = jnp.zeros((cfg.context_len, D), jnp.float32)
    pe = pe.at[:, 0::2].set(jnp.sin(position * div_term))
    pe = pe.at[:, 1::2].set(jnp.cos(position * div_term))
    params["pe"] = pe
    return params


# --------------------------- one-time prepare (idx-independent) --------------
def prepare(params, cfg, B, T):
    """One-time transform of parameters + idx-independent constants into
    kernel-ready arrays. Call once, reuse across forwards."""
    D, V, L, H = cfg.d_model, cfg.vocab_size, cfg.num_layers, cfg.num_heads
    hd = D // H
    BT = B * T
    Vpad = ((V + 127) // 128) * 128
    W = 4 * D                                    # packing width (lane-dense 128)

    # fold 1/sqrt(hd) into the Q columns of w_qkv / b_qkv (one-time, constants)
    scale = 1.0 / math.sqrt(hd)
    w_qkv = params["w_qkv"].at[:, :, :D].multiply(scale)
    b_qkv = params["b_qkv"].at[:, :, :D].multiply(scale)

    def pad_row(v):
        return jnp.zeros((W,), jnp.float32).at[:v.shape[0]].set(v.astype(jnp.float32))

    rows = []
    for l in range(L):
        rows += [pad_row(params["ln1_w"][l, 0]), pad_row(params["ln1_b"][l, 0]),
                 pad_row(b_qkv[l, 0]),           pad_row(params["b_proj"][l, 0]),
                 pad_row(params["ln2_w"][l, 0]), pad_row(params["ln2_b"][l, 0]),
                 pad_row(params["b_fc"][l, 0]),  pad_row(params["b_fcp"][l, 0])]
    rows += [pad_row(params["ln_f_w"][0]), pad_row(params["ln_f_b"][0])]
    small = jnp.stack(rows)                      # (8L+2, 4D) f32

    bf = lambda a: a.astype(jnp.bfloat16)        # weights cast once, here
    wte = params["wte"]
    wte_t = jnp.zeros((D, Vpad), jnp.float32).at[:, :V].set(wte.T)

    # positional slab for the folded (B*T, D) layout
    pos = jnp.tile(params["pe"][:T], (B, 1)).astype(jnp.float32)       # (BT, D)

    # block-diagonal causal additive bias, tiled per head: (H*BT, BT)
    r = jnp.arange(BT, dtype=jnp.int32)
    same_seq = (r[:, None] // T) == (r[None, :] // T)
    causal = r[None, :] <= r[:, None]
    bias_bt = jnp.where(same_seq & causal, 0.0, -1e30).astype(jnp.float32)
    bias = jnp.tile(bias_bt, (H, 1))

    return dict(
        B=B, T=T, Vpad=Vpad,
        pos=pos, bias=bias, small=small,
        wte=bf(wte), wte_t=bf(wte_t),
        w_qkv=bf(w_qkv), w_proj=bf(params["w_proj"]),
        w_fc=bf(params["w_fc"]), w_fcp=bf(params["w_fcp"]),
    )


# --------------------------- full forward ------------------------------------
def decoder_transformer_forward(idx, prep, cfg):
    B, T = idx.shape
    assert T <= cfg.context_len
    assert B == prep["B"] and T == prep["T"]
    D, V = cfg.d_model, cfg.vocab_size
    H, L = cfg.num_heads, cfg.num_layers
    BT = B * T
    Vpad = prep["Vpad"]

    idx_flat = idx.reshape(BT, 1).astype(jnp.int32)

    logits_pad = pl.pallas_call(
        functools.partial(fwd_kernel, n_layer=L, n_head=H),
        out_shape=jax.ShapeDtypeStruct((BT, Vpad), jnp.float32),
    )(idx_flat, prep["pos"], prep["bias"], prep["small"],
      prep["wte"], prep["wte_t"],
      prep["w_qkv"], prep["w_proj"], prep["w_fc"], prep["w_fcp"])

    return logits_pad[:, :V].reshape(B, T, V)                 # (B, T, vocab_size)


# --------------------------- main --------------------------------------------
if __name__ == "__main__":
    cfg = Config()
    key = jax.random.PRNGKey(0)
    kp, kx = jax.random.split(key)
    params = init_params(kp, cfg)

    B, T = 2, 8
    idx = jax.random.randint(kx, (B, T), 0, cfg.vocab_size, dtype=jnp.int32)

    prep = prepare(params, cfg, B, T)             # one-time, idx-independent
    logits = decoder_transformer_forward(idx, prep, cfg)
    logits = jax.block_until_ready(logits)
    assert logits.shape == (B, T, cfg.vocab_size)
    assert bool(jnp.all(jnp.isfinite(logits)))
    print("KERNEL_OK")
</pallas_src>

<mosaic_0001>
module attributes {stable_mosaic.version = 11 : i64} {
  func.func @fwd_kernel(%arg0: memref<16x1xi32, #tpu.memory_space<vmem>>, %arg1: memref<16x32xf32, #tpu.memory_space<vmem>>, %arg2: memref<64x16xf32, #tpu.memory_space<vmem>>, %arg3: memref<18x128xf32, #tpu.memory_space<vmem>>, %arg4: memref<64x32xbf16, #tpu.memory_space<vmem>>, %arg5: memref<32x128xbf16, #tpu.memory_space<vmem>>, %arg6: memref<2x32x96xbf16, #tpu.memory_space<vmem>>, %arg7: memref<2x32x32xbf16, #tpu.memory_space<vmem>>, %arg8: memref<2x32x128xbf16, #tpu.memory_space<vmem>>, %arg9: memref<2x128x32xbf16, #tpu.memory_space<vmem>>, %arg10: memref<16x128xf32, #tpu.memory_space<vmem>>) attributes {dimension_semantics = [], scalar_prefetch = 0 : i64, scratch_operands = 0 : i64, tpu.core_type = #tpu.core_type<tc>} {
    %c0 = arith.constant 0 : index
    %c0_0 = arith.constant 0 : index
    %0 = vector.load %arg3[%c0, %c0_0] : memref<18x128xf32, #tpu.memory_space<vmem>>, vector<18x128xf32>
    %1 = tpu.iota {dimensions = array<i32: 1>} : vector<16x64xi32>
    %c0_1 = arith.constant 0 : index
    %c0_2 = arith.constant 0 : index
    %2 = vector.load %arg0[%c0_1, %c0_2] : memref<16x1xi32, #tpu.memory_space<vmem>>, vector<16x1xi32>
    %3 = vector.broadcast %2 : vector<16x1xi32> to vector<16x64xi32>
    %4 = arith.cmpi eq, %1, %3 : vector<16x64xi32>
    %5 = arith.extui %4 : vector<16x64xi1> to vector<16x64xi32>
    %6 = arith.sitofp %5 : vector<16x64xi32> to vector<16x64xf32>
    %7 = arith.truncf %6 : vector<16x64xf32> to vector<16x64xbf16>
    %c0_3 = arith.constant 0 : index
    %c0_4 = arith.constant 0 : index
    %8 = vector.load %arg4[%c0_3, %c0_4] : memref<64x32xbf16, #tpu.memory_space<vmem>>, vector<64x32xbf16>
    %cst = arith.constant dense<0.000000e+00> : vector<16x32xf32>
    %9 = tpu.matmul %7, %8, %cst {dimension_numbers = #tpu.dot_dimension_numbers<[1], [0], [0], [1], [0, 0, 1, 1], [], []>} : vector<16x64xbf16>, vector<64x32xbf16>, vector<16x32xf32> -> vector<16x32xf32>
    %c0_5 = arith.constant 0 : index
    %c0_6 = arith.constant 0 : index
    %10 = vector.load %arg1[%c0_5, %c0_6] : memref<16x32xf32, #tpu.memory_space<vmem>>, vector<16x32xf32>
    %11 = arith.addf %9, %10 : vector<16x32xf32>
    %c0_7 = arith.constant 0 : index
    %c0_8 = arith.constant 0 : index
    %12 = vector.load %arg2[%c0_7, %c0_8] : memref<64x16xf32, #tpu.memory_space<vmem>>, vector<64x16xf32>
    %13 = vector.extract_strided_slice %0 {offsets = [0, 0], sizes = [1, 32], strides = [1, 1]} : vector<18x128xf32> to vector<1x32xf32>
    %14 = vector.extract_strided_slice %0 {offsets = [1, 0], sizes = [1, 32], strides = [1, 1]} : vector<18x128xf32> to vector<1x32xf32>
    %15 = vector.extract_strided_slice %0 {offsets = [2, 0], sizes = [1, 96], strides = [1, 1]} : vector<18x128xf32> to vector<1x96xf32>
    %16 = vector.extract_strided_slice %0 {offsets = [3, 0], sizes = [1, 32], strides = [1, 1]} : vector<18x128xf32> to vector<1x32xf32>
    %17 = vector.extract_strided_slice %0 {offsets = [4, 0], sizes = [1, 32], strides = [1, 1]} : vector<18x128xf32> to vector<1x32xf32>
    %18 = vector.extract_strided_slice %0 {offsets = [5, 0], sizes = [1, 32], strides = [1, 1]} : vector<18x128xf32> to vector<1x32xf32>
    %19 = vector.extract_strided_slice %0 {offsets = [6, 0], sizes = [1, 128], strides = [1, 1]} : vector<18x128xf32> to vector<1x128xf32>
    %20 = vector.extract_strided_slice %0 {offsets = [7, 0], sizes = [1, 32], strides = [1, 1]} : vector<18x128xf32> to vector<1x32xf32>
    %cst_9 = arith.constant dense<0.000000e+00> : vector<16xf32>
    %21 = vector.multi_reduction <add>, %11, %cst_9 [1] : vector<16x32xf32> to vector<16xf32>
    %22 = vector.shape_cast %21 : vector<16xf32> to vector<16x1xf32>
    %cst_10 = arith.constant 3.200000e+01 : f32
    %23 = vector.broadcast %cst_10 : f32 to vector<16x1xf32>
    %24 = arith.divf %22, %23 : vector<16x1xf32>
    %25 = vector.broadcast %24 : vector<16x1xf32> to vector<16x32xf32>
    %26 = arith.subf %11, %25 : vector<16x32xf32>
    %27 = arith.mulf %26, %26 : vector<16x32xf32>
    %cst_11 = arith.constant dense<0.000000e+00> : vector<16xf32>
    %28 = vector.multi_reduction <add>, %27, %cst_11 [1] : vector<16x32xf32> to vector<16xf32>
    %29 = vector.shape_cast %28 : vector<16xf32> to vector<16x1xf32>
    %cst_12 = arith.constant 3.200000e+01 : f32
    %30 = vector.broadcast %cst_12 : f32 to vector<16x1xf32>
    %31 = arith.divf %29, %30 : vector<16x1xf32>
    %cst_13 = arith.constant 9.99999974E-6 : f32
    %32 = vector.broadcast %cst_13 : f32 to vector<16x1xf32>
    %33 = arith.addf %31, %32 : vector<16x1xf32>
    %34 = math.rsqrt %33 : vector<16x1xf32>
    %35 = vector.broadcast %34 : vector<16x1xf32> to vector<16x32xf32>
    %36 = arith.mulf %26, %35 : vector<16x32xf32>
    %37 = vector.broadcast %13 : vector<1x32xf32> to vector<16x32xf32>
    %38 = arith.mulf %36, %37 : vector<16x32xf32>
    %39 = vector.broadcast %14 : vector<1x32xf32> to vector<16x32xf32>
    %40 = arith.addf %38, %39 : vector<16x32xf32>
    %41 = arith.truncf %40 : vector<16x32xf32> to vector<16x32xbf16>
    %c0_14 = arith.constant 0 : index
    %c0_15 = arith.constant 0 : index
    %c0_16 = arith.constant 0 : index
    %42 = vector.load %arg6[%c0_14, %c0_15, %c0_16] : memref<2x32x96xbf16, #tpu.memory_space<vmem>>, vector<1x32x96xbf16>
    %43 = vector.shape_cast %42 : vector<1x32x96xbf16> to vector<32x96xbf16>
    %cst_17 = arith.constant dense<0.000000e+00> : vector<16x96xf32>
    %44 = tpu.matmul %41, %43, %cst_17 {dimension_numbers = #tpu.dot_dimension_numbers<[1], [0], [0], [1], [0, 0, 1, 1], [], []>} : vector<16x32xbf16>, vector<32x96xbf16>, vector<16x96xf32> -> vector<16x96xf32>
    %45 = vector.broadcast %15 : vector<1x96xf32> to vector<16x96xf32>
    %46 = arith.addf %44, %45 : vector<16x96xf32>
    %47 = arith.truncf %46 : vector<16x96xf32> to vector<16x96xbf16>
    %48 = vector.extract_strided_slice %47 {offsets = [0, 0], sizes = [16, 8], strides = [1, 1]} : vector<16x96xbf16> to vector<16x8xbf16>
    %49 = vector.extract_strided_slice %47 {offsets = [0, 32], sizes = [16, 8], strides = [1, 1]} : vector<16x96xbf16> to vector<16x8xbf16>
    %cst_18 = arith.constant dense<0.000000e+00> : vector<16x16xf32>
    %50 = tpu.matmul %48, %49, %cst_18 {dimension_numbers = #tpu.dot_dimension_numbers<[1], [1], [0], [0], [0, 0, 1, 0], [], []>} : vector<16x8xbf16>, vector<16x8xbf16>, vector<16x16xf32> -> vector<16x16xf32>
    %51 = vector.extract_strided_slice %47 {offsets = [0, 8], sizes = [16, 8], strides = [1, 1]} : vector<16x96xbf16> to vector<16x8xbf16>
    %52 = vector.extract_strided_slice %47 {offsets = [0, 40], sizes = [16, 8], strides = [1, 1]} : vector<16x96xbf16> to vector<16x8xbf16>
    %cst_19 = arith.constant dense<0.000000e+00> : vector<16x16xf32>
    %53 = tpu.matmul %51, %52, %cst_19 {dimension_numbers = #tpu.dot_dimension_numbers<[1], [1], [0], [0], [0, 0, 1, 0], [], []>} : vector<16x8xbf16>, vector<16x8xbf16>, vector<16x16xf32> -> vector<16x16xf32>
    %54 = vector.extract_strided_slice %47 {offsets = [0, 16], sizes = [16, 8], strides = [1, 1]} : vector<16x96xbf16> to vector<16x8xbf16>
    %55 = vector.extract_strided_slice %47 {offsets = [0, 48], sizes = [16, 8], strides = [1, 1]} : vector<16x96xbf16> to vector<16x8xbf16>
    %cst_20 = arith.constant dense<0.000000e+00> : vector<16x16xf32>
    %56 = tpu.matmul %54, %55, %cst_20 {dimension_numbers = #tpu.dot_dimension_numbers<[1], [1], [0], [0], [0, 0, 1, 0], [], []>} : vector<16x8xbf16>, vector<16x8xbf16>, vector<16x16xf32> -> vector<16x16xf32>
    %57 = vector.extract_strided_slice %47 {offsets = [0, 24], sizes = [16, 8], strides = [1, 1]} : vector<16x96xbf16> to vector<16x8xbf16>
    %58 = vector.extract_strided_slice %47 {offsets = [0, 56], sizes = [16, 8], strides = [1, 1]} : vector<16x96xbf16> to vector<16x8xbf16>
    %cst_21 = arith.constant dense<0.000000e+00> : vector<16x16xf32>
    %59 = tpu.matmul %57, %58, %cst_21 {dimension_numbers = #tpu.dot_dimension_numbers<[1], [1], [0], [0], [0, 0, 1, 0], [], []>} : vector<16x8xbf16>, vector<16x8xbf16>, vector<16x16xf32> -> vector<16x16xf32>
    %60 = tpu.concatenate %50, %53, %56, %59 in 0 : vector<16x16xf32>, vector<16x16xf32>, vector<16x16xf32>, vector<16x16xf32> -> vector<64x16xf32>
    %61 = arith.addf %60, %12 : vector<64x16xf32>
    %cst_22 = arith.constant dense<0xFF800000> : vector<64xf32>
    %62 = vector.multi_reduction <maximumf>, %61, %cst_22 [1] : vector<64x16xf32> to vector<64xf32>
    %63 = vector.shape_cast %62 : vector<64xf32> to vector<64x1xf32>
    %64 = vector.broadcast %63 : vector<64x1xf32> to vector<64x16xf32>
    %65 = arith.subf %61, %64 : vector<64x16xf32>
    %66 = math.exp %65 : vector<64x16xf32>
    %cst_23 = arith.constant dense<0.000000e+00> : vector<64xf32>
    %67 = vector.multi_reduction <add>, %66, %cst_23 [1] : vector<64x16xf32> to vector<64xf32>
    %68 = vector.shape_cast %67 : vector<64xf32> to vector<64x1xf32>
    %69 = tpu.reciprocal %68 {approx = true} : vector<64x1xf32> -> vector<64x1xf32>
    %70 = vector.broadcast %69 : vector<64x1xf32> to vector<64x16xf32>
    %71 = arith.mulf %66, %70 : vector<64x16xf32>
    %72 = arith.truncf %71 : vector<64x16xf32> to vector<64x16xbf16>
    %c0_24 = arith.constant 0 : index
    %c0_25 = arith.constant 0 : index
    %c0_26 = arith.constant 0 : index
    %73 = vector.load %arg7[%c0_24, %c0_25, %c0_26] : memref<2x32x32xbf16, #tpu.memory_space<vmem>>, vector<1x32x32xbf16>
    %74 = vector.shape_cast %73 : vector<1x32x32xbf16> to vector<32x32xbf16>
    %cst_27 = arith.constant 0.000000e+00 : f32
    %75 = vector.broadcast %cst_27 : f32 to vector<16x32xf32>
    %76 = vector.extract_strided_slice %72 {offsets = [0, 0], sizes = [16, 16], strides = [1, 1]} : vector<64x16xbf16> to vector<16x16xbf16>
    %77 = vector.extract_strided_slice %47 {offsets = [0, 64], sizes = [16, 8], strides = [1, 1]} : vector<16x96xbf16> to vector<16x8xbf16>
    %cst_28 = arith.constant dense<0.000000e+00> : vector<16x8xf32>
    %78 = tpu.matmul %76, %77, %cst_28 {dimension_numbers = #tpu.dot_dimension_numbers<[1], [0], [0], [1], [0, 0, 1, 1], [], []>} : vector<16x16xbf16>, vector<16x8xbf16>, vector<16x8xf32> -> vector<16x8xf32>
    %79 = arith.truncf %78 : vector<16x8xf32> to vector<16x8xbf16>
    %80 = vector.extract_strided_slice %74 {offsets = [0, 0], sizes = [8, 32], strides = [1, 1]} : vector<32x32xbf16> to vector<8x32xbf16>
    %cst_29 = arith.constant dense<0.000000e+00> : vector<16x32xf32>
    %81 = tpu.matmul %79, %80, %cst_29 {dimension_numbers = #tpu.dot_dimension_numbers<[1], [0], [0], [1], [0, 0, 1, 1], [], []>} : vector<16x8xbf16>, vector<8x32xbf16>, vector<16x32xf32> -> vector<16x32xf32>
    %82 = arith.addf %75, %81 : vector<16x32xf32>
    %83 = vector.extract_strided_slice %72 {offsets = [16, 0], sizes = [16, 16], strides = [1, 1]} : vector<64x16xbf16> to vector<16x16xbf16>
    %84 = vector.extract_strided_slice %47 {offsets = [0, 72], sizes = [16, 8], strides = [1, 1]} : vector<16x96xbf16> to vector<16x8xbf16>
    %cst_30 = arith.constant dense<0.000000e+00> : vector<16x8xf32>
    %85 = tpu.matmul %83, %84, %cst_30 {dimension_numbers = #tpu.dot_dimension_numbers<[1], [0], [0], [1], [0, 0, 1, 1], [], []>} : vector<16x16xbf16>, vector<16x8xbf16>, vector<16x8xf32> -> vector<16x8xf32>
    %86 = arith.truncf %85 : vector<16x8xf32> to vector<16x8xbf16>
    %87 = vector.extract_strided_slice %74 {offsets = [8, 0], sizes = [8, 32], strides = [1, 1]} : vector<32x32xbf16> to vector<8x32xbf16>
    %cst_31 = arith.constant dense<0.000000e+00> : vector<16x32xf32>
    %88 = tpu.matmul %86, %87, %cst_31 {dimension_numbers = #tpu.dot_dimension_numbers<[1], [0], [0], [1], [0, 0, 1, 1], [], []>} : vector<16x8xbf16>, vector<8x32xbf16>, vector<16x32xf32> -> vector<16x32xf32>
    %89 = arith.addf %82, %88 : vector<16x32xf32>
    %90 = vector.extract_strided_slice %72 {offsets = [32, 0], sizes = [16, 16], strides = [1, 1]} : vector<64x16xbf16> to vector<16x16xbf16>
    %91 = vector.extract_strided_slice %47 {offsets = [0, 80], sizes = [16, 8], strides = [1, 1]} : vector<16x96xbf16> to vector<16x8xbf16>
    %cst_32 = arith.constant dense<0.000000e+00> : vector<16x8xf32>
    %92 = tpu.matmul %90, %91, %cst_32 {dimension_numbers = #tpu.dot_dimension_numbers<[1], [0], [0], [1], [0, 0, 1, 1], [], []>} : vector<16x16xbf16>, vector<16x8xbf16>, vector<16x8xf32> -> vector<16x8xf32>
    %93 = arith.truncf %92 : vector<16x8xf32> to vector<16x8xbf16>
    %94 = vector.extract_strided_slice %74 {offsets = [16, 0], sizes = [8, 32], strides = [1, 1]} : vector<32x32xbf16> to vector<8x32xbf16>
    %cst_33 = arith.constant dense<0.000000e+00> : vector<16x32xf32>
    %95 = tpu.matmul %93, %94, %cst_33 {dimension_numbers = #tpu.dot_dimension_numbers<[1], [0], [0], [1], [0, 0, 1, 1], [], []>} : vector<16x8xbf16>, vector<8x32xbf16>, vector<16x32xf32> -> vector<16x32xf32>
    %96 = arith.addf %89, %95 : vector<16x32xf32>
    %97 = vector.extract_strided_slice %72 {offsets = [48, 0], sizes = [16, 16], strides = [1, 1]} : vector<64x16xbf16> to vector<16x16xbf16>
    %98 = vector.extract_strided_slice %47 {offsets = [0, 88], sizes = [16, 8], strides = [1, 1]} : vector<16x96xbf16> to vector<16x8xbf16>
    %cst_34 = arith.constant dense<0.000000e+00> : vector<16x8xf32>
    %99 = tpu.matmul %97, %98, %cst_34 {dimension_numbers = #tpu.dot_dimension_numbers<[1], [0], [0], [1], [0, 0, 1, 1], [], []>} : vector<16x16xbf16>, vector<16x8xbf16>, vector<16x8xf32> -> vector<16x8xf32>
    %100 = arith.truncf %99 : vector<16x8xf32> to vector<16x8xbf16>
    %101 = vector.extract_strided_slice %74 {offsets = [24, 0], sizes = [8, 32], strides = [1, 1]} : vector<32x32xbf16> to vector<8x32xbf16>
    %cst_35 = arith.constant dense<0.000000e+00> : vector<16x32xf32>
    %102 = tpu.matmul %100, %101, %cst_35 {dimension_numbers = #tpu.dot_dimension_numbers<[1], [0], [0], [1], [0, 0, 1, 1], [], []>} : vector<16x8xbf16>, vector<8x32xbf16>, vector<16x32xf32> -> vector<16x32xf32>
    %103 = arith.addf %96, %102 : vector<16x32xf32>
    %104 = arith.addf %11, %103 : vector<16x32xf32>
    %105 = vector.broadcast %16 : vector<1x32xf32> to vector<16x32xf32>
    %106 = arith.addf %104, %105 : vector<16x32xf32>
    %cst_36 = arith.constant dense<0.000000e+00> : vector<16xf32>
    %107 = vector.multi_reduction <add>, %106, %cst_36 [1] : vector<16x32xf32> to vector<16xf32>
    %108 = vector.shape_cast %107 : vector<16xf32> to vector<16x1xf32>
    %cst_37 = arith.constant 3.200000e+01 : f32
    %109 = vector.broadcast %cst_37 : f32 to vector<16x1xf32>
    %110 = arith.divf %108, %109 : vector<16x1xf32>
    %111 = vector.broadcast %110 : vector<16x1xf32> to vector<16x32xf32>
    %112 = arith.subf %106, %111 : vector<16x32xf32>
    %113 = arith.mulf %112, %112 : vector<16x32xf32>
    %cst_38 = arith.constant dense<0.000000e+00> : vector<16xf32>
    %114 = vector.multi_reduction <add>, %113, %cst_38 [1] : vector<16x32xf32> to vector<16xf32>
    %115 = vector.shape_cast %114 : vector<16xf32> to vector<16x1xf32>
    %cst_39 = arith.constant 3.200000e+01 : f32
    %116 = vector.broadcast %cst_39 : f32 to vector<16x1xf32>
    %117 = arith.divf %115, %116 : vector<16x1xf32>
    %cst_40 = arith.constant 9.99999974E-6 : f32
    %118 = vector.broadcast %cst_40 : f32 to vector<16x1xf32>
    %119 = arith.addf %117, %118 : vector<16x1xf32>
    %120 = math.rsqrt %119 : vector<16x1xf32>
    %121 = vector.broadcast %120 : vector<16x1xf32> to vector<16x32xf32>
    %122 = arith.mulf %112, %121 : vector<16x32xf32>
    %123 = vector.broadcast %17 : vector<1x32xf32> to vector<16x32xf32>
    %124 = arith.mulf %122, %123 : vector<16x32xf32>
    %125 = vector.broadcast %18 : vector<1x32xf32> to vector<16x32xf32>
    %126 = arith.addf %124, %125 : vector<16x32xf32>
    %127 = arith.truncf %126 : vector<16x32xf32> to vector<16x32xbf16>
    %c0_41 = arith.constant 0 : index
    %c0_42 = arith.constant 0 : index
    %c0_43 = arith.constant 0 : index
    %128 = vector.load %arg8[%c0_41, %c0_42, %c0_43] : memref<2x32x128xbf16, #tpu.memory_space<vmem>>, vector<1x32x128xbf16>
    %129 = vector.shape_cast %128 : vector<1x32x128xbf16> to vector<32x128xbf16>
    %cst_44 = arith.constant dense<0.000000e+00> : vector<16x128xf32>
    %130 = tpu.matmul %127, %129, %cst_44 {dimension_numbers = #tpu.dot_dimension_numbers<[1], [0], [0], [1], [0, 0, 1, 1], [], []>} : vector<16x32xbf16>, vector<32x128xbf16>, vector<16x128xf32> -> vector<16x128xf32>
    %131 = vector.broadcast %19 : vector<1x128xf32> to vector<16x128xf32>
    %132 = arith.addf %130, %131 : vector<16x128xf32>
    %cst_45 = arith.constant 5.000000e-01 : f32
    %133 = vector.broadcast %cst_45 : f32 to vector<16x128xf32>
    %134 = arith.mulf %133, %132 : vector<16x128xf32>
    %cst_46 = arith.constant 4.471500e-02 : f32
    %135 = vector.broadcast %cst_46 : f32 to vector<16x128xf32>
    %136 = arith.mulf %135, %132 : vector<16x128xf32>
    %137 = arith.mulf %136, %132 : vector<16x128xf32>
    %138 = arith.mulf %137, %132 : vector<16x128xf32>
    %139 = arith.addf %132, %138 : vector<16x128xf32>
    %cst_47 = arith.constant 0.797884583 : f32
    %140 = vector.broadcast %cst_47 : f32 to vector<16x128xf32>
    %141 = arith.mulf %140, %139 : vector<16x128xf32>
    %142 = math.tanh %141 : vector<16x128xf32>
    %cst_48 = arith.constant 1.000000e+00 : f32
    %143 = vector.broadcast %cst_48 : f32 to vector<16x128xf32>
    %144 = arith.addf %143, %142 : vector<16x128xf32>
    %145 = arith.mulf %134, %144 : vector<16x128xf32>
    %146 = arith.truncf %145 : vector<16x128xf32> to vector<16x128xbf16>
    %c0_49 = arith.constant 0 : index
    %c0_50 = arith.constant 0 : index
    %c0_51 = arith.constant 0 : index
    %147 = vector.load %arg9[%c0_49, %c0_50, %c0_51] : memref<2x128x32xbf16, #tpu.memory_space<vmem>>, vector<1x128x32xbf16>
    %148 = vector.shape_cast %147 : vector<1x128x32xbf16> to vector<128x32xbf16>
    %cst_52 = arith.constant dense<0.000000e+00> : vector<16x32xf32>
    %149 = tpu.matmul %146, %148, %cst_52 {dimension_numbers = #tpu.dot_dimension_numbers<[1], [0], [0], [1], [0, 0, 1, 1], [], []>} : vector<16x128xbf16>, vector<128x32xbf16>, vector<16x32xf32> -> vector<16x32xf32>
    %150 = vector.broadcast %20 : vector<1x32xf32> to vector<16x32xf32>
    %151 = arith.addf %149, %150 : vector<16x32xf32>
    %152 = arith.addf %106, %151 : vector<16x32xf32>
    %153 = vector.extract_strided_slice %0 {offsets = [8, 0], sizes = [1, 32], strides = [1, 1]} : vector<18x128xf32> to vector<1x32xf32>
    %154 = vector.extract_strided_slice %0 {offsets = [9, 0], sizes = [1, 32], strides = [1, 1]} : vector<18x128xf32> to vector<1x32xf32>
    %155 = vector.extract_strided_slice %0 {offsets = [10, 0], sizes = [1, 96], strides = [1, 1]} : vector<18x128xf32> to vector<1x96xf32>
    %156 = vector.extract_strided_slice %0 {offsets = [11, 0], sizes = [1, 32], strides = [1, 1]} : vector<18x128xf32> to vector<1x32xf32>
    %157 = vector.extract_strided_slice %0 {offsets = [12, 0], sizes = [1, 32], strides = [1, 1]} : vector<18x128xf32> to vector<1x32xf32>
    %158 = vector.extract_strided_slice %0 {offsets = [13, 0], sizes = [1, 32], strides = [1, 1]} : vector<18x128xf32> to vector<1x32xf32>
    %159 = vector.extract_strided_slice %0 {offsets = [14, 0], sizes = [1, 128], strides = [1, 1]} : vector<18x128xf32> to vector<1x128xf32>
    %160 = vector.extract_strided_slice %0 {offsets = [15, 0], sizes = [1, 32], strides = [1, 1]} : vector<18x128xf32> to vector<1x32xf32>
    %cst_53 = arith.constant dense<0.000000e+00> : vector<16xf32>
    %161 = vector.multi_reduction <add>, %152, %cst_53 [1] : vector<16x32xf32> to vector<16xf32>
    %162 = vector.shape_cast %161 : vector<16xf32> to vector<16x1xf32>
    %cst_54 = arith.constant 3.200000e+01 : f32
    %163 = vector.broadcast %cst_54 : f32 to vector<16x1xf32>
    %164 = arith.divf %162, %163 : vector<16x1xf32>
    %165 = vector.broadcast %164 : vector<16x1xf32> to vector<16x32xf32>
    %166 = arith.subf %152, %165 : vector<16x32xf32>
    %167 = arith.mulf %166, %166 : vector<16x32xf32>
    %cst_55 = arith.constant dense<0.000000e+00> : vector<16xf32>
    %168 = vector.multi_reduction <add>, %167, %cst_55 [1] : vector<16x32xf32> to vector<16xf32>
    %169 = vector.shape_cast %168 : vector<16xf32> to vector<16x1xf32>
    %cst_56 = arith.constant 3.200000e+01 : f32
    %170 = vector.broadcast %cst_56 : f32 to vector<16x1xf32>
    %171 = arith.divf %169, %170 : vector<16x1xf32>
    %cst_57 = arith.constant 9.99999974E-6 : f32
    %172 = vector.broadcast %cst_57 : f32 to vector<16x1xf32>
    %173 = arith.addf %171, %172 : vector<16x1xf32>
    %174 = math.rsqrt %173 : vector<16x1xf32>
    %175 = vector.broadcast %174 : vector<16x1xf32> to vector<16x32xf32>
    %176 = arith.mulf %166, %175 : vector<16x32xf32>
    %177 = vector.broadcast %153 : vector<1x32xf32> to vector<16x32xf32>
    %178 = arith.mulf %176, %177 : vector<16x32xf32>
    %179 = vector.broadcast %154 : vector<1x32xf32> to vector<16x32xf32>
    %180 = arith.addf %178, %179 : vector<16x32xf32>
    %181 = arith.truncf %180 : vector<16x32xf32> to vector<16x32xbf16>
    %c1 = arith.constant 1 : index
    %c0_58 = arith.constant 0 : index
    %c0_59 = arith.constant 0 : index
    %182 = vector.load %arg6[%c1, %c0_58, %c0_59] : memref<2x32x96xbf16, #tpu.memory_space<vmem>>, vector<1x32x96xbf16>
    %183 = vector.shape_cast %182 : vector<1x32x96xbf16> to vector<32x96xbf16>
    %cst_60 = arith.constant dense<0.000000e+00> : vector<16x96xf32>
    %184 = tpu.matmul %181, %183, %cst_60 {dimension_numbers = #tpu.dot_dimension_numbers<[1], [0], [0], [1], [0, 0, 1, 1], [], []>} : vector<16x32xbf16>, vector<32x96xbf16>, vector<16x96xf32> -> vector<16x96xf32>
    %185 = vector.broadcast %155 : vector<1x96xf32> to vector<16x96xf32>
    %186 = arith.addf %184, %185 : vector<16x96xf32>
    %187 = arith.truncf %186 : vector<16x96xf32> to vector<16x96xbf16>
    %188 = vector.extract_strided_slice %187 {offsets = [0, 0], sizes = [16, 8], strides = [1, 1]} : vector<16x96xbf16> to vector<16x8xbf16>
    %189 = vector.extract_strided_slice %187 {offsets = [0, 32], sizes = [16, 8], strides = [1, 1]} : vector<16x96xbf16> to vector<16x8xbf16>
    %cst_61 = arith.constant dense<0.000000e+00> : vector<16x16xf32>
    %190 = tpu.matmul %188, %189, %cst_61 {dimension_numbers = #tpu.dot_dimension_numbers<[1], [1], [0], [0], [0, 0, 1, 0], [], []>} : vector<16x8xbf16>, vector<16x8xbf16>, vector<16x16xf32> -> vector<16x16xf32>
    %191 = vector.extract_strided_slice %187 {offsets = [0, 8], sizes = [16, 8], strides = [1, 1]} : vector<16x96xbf16> to vector<16x8xbf16>
    %192 = vector.extract_strided_slice %187 {offsets = [0, 40], sizes = [16, 8], strides = [1, 1]} : vector<16x96xbf16> to vector<16x8xbf16>
    %cst_62 = arith.constant dense<0.000000e+00> : vector<16x16xf32>
    %193 = tpu.matmul %191, %192, %cst_62 {dimension_numbers = #tpu.dot_dimension_numbers<[1], [1], [0], [0], [0, 0, 1, 0], [], []>} : vector<16x8xbf16>, vector<16x8xbf16>, vector<16x16xf32> -> vector<16x16xf32>
    %194 = vector.extract_strided_slice %187 {offsets = [0, 16], sizes = [16, 8], strides = [1, 1]} : vector<16x96xbf16> to vector<16x8xbf16>
    %195 = vector.extract_strided_slice %187 {offsets = [0, 48], sizes = [16, 8], strides = [1, 1]} : vector<16x96xbf16> to vector<16x8xbf16>
    %cst_63 = arith.constant dense<0.000000e+00> : vector<16x16xf32>
    %196 = tpu.matmul %194, %195, %cst_63 {dimension_numbers = #tpu.dot_dimension_numbers<[1], [1], [0], [0], [0, 0, 1, 0], [], []>} : vector<16x8xbf16>, vector<16x8xbf16>, vector<16x16xf32> -> vector<16x16xf32>
    %197 = vector.extract_strided_slice %187 {offsets = [0, 24], sizes = [16, 8], strides = [1, 1]} : vector<16x96xbf16> to vector<16x8xbf16>
    %198 = vector.extract_strided_slice %187 {offsets = [0, 56], sizes = [16, 8], strides = [1, 1]} : vector<16x96xbf16> to vector<16x8xbf16>
    %cst_64 = arith.constant dense<0.000000e+00> : vector<16x16xf32>
    %199 = tpu.matmul %197, %198, %cst_64 {dimension_numbers = #tpu.dot_dimension_numbers<[1], [1], [0], [0], [0, 0, 1, 0], [], []>} : vector<16x8xbf16>, vector<16x8xbf16>, vector<16x16xf32> -> vector<16x16xf32>
    %200 = tpu.concatenate %190, %193, %196, %199 in 0 : vector<16x16xf32>, vector<16x16xf32>, vector<16x16xf32>, vector<16x16xf32> -> vector<64x16xf32>
    %201 = arith.addf %200, %12 : vector<64x16xf32>
    %cst_65 = arith.constant dense<0xFF800000> : vector<64xf32>
    %202 = vector.multi_reduction <maximumf>, %201, %cst_65 [1] : vector<64x16xf32> to vector<64xf32>
    %203 = vector.shape_cast %202 : vector<64xf32> to vector<64x1xf32>
    %204 = vector.broadcast %203 : vector<64x1xf32> to vector<64x16xf32>
    %205 = arith.subf %201, %204 : vector<64x16xf32>
    %206 = math.exp %205 : vector<64x16xf32>
    %cst_66 = arith.constant dense<0.000000e+00> : vector<64xf32>
    %207 = vector.multi_reduction <add>, %206, %cst_66 [1] : vector<64x16xf32> to vector<64xf32>
    %208 = vector.shape_cast %207 : vector<64xf32> to vector<64x1xf32>
    %209 = tpu.reciprocal %208 {approx = true} : vector<64x1xf32> -> vector<64x1xf32>
    %210 = vector.broadcast %209 : vector<64x1xf32> to vector<64x16xf32>
    %211 = arith.mulf %206, %210 : vector<64x16xf32>
    %212 = arith.truncf %211 : vector<64x16xf32> to vector<64x16xbf16>
    %c1_67 = arith.constant 1 : index
    %c0_68 = arith.constant 0 : index
    %c0_69 = arith.constant 0 : index
    %213 = vector.load %arg7[%c1_67, %c0_68, %c0_69] : memref<2x32x32xbf16, #tpu.memory_space<vmem>>, vector<1x32x32xbf16>
    %214 = vector.shape_cast %213 : vector<1x32x32xbf16> to vector<32x32xbf16>
    %cst_70 = arith.constant 0.000000e+00 : f32
    %215 = vector.broadcast %cst_70 : f32 to vector<16x32xf32>
    %216 = vector.extract_strided_slice %212 {offsets = [0, 0], sizes = [16, 16], strides = [1, 1]} : vector<64x16xbf16> to vector<16x16xbf16>
    %217 = vector.extract_strided_slice %187 {offsets = [0, 64], sizes = [16, 8], strides = [1, 1]} : vector<16x96xbf16> to vector<16x8xbf16>
    %cst_71 = arith.constant dense<0.000000e+00> : vector<16x8xf32>
    %218 = tpu.matmul %216, %217, %cst_71 {dimension_numbers = #tpu.dot_dimension_numbers<[1], [0], [0], [1], [0, 0, 1, 1], [], []>} : vector<16x16xbf16>, vector<16x8xbf16>, vector<16x8xf32> -> vector<16x8xf32>
    %219 = arith.truncf %218 : vector<16x8xf32> to vector<16x8xbf16>
    %220 = vector.extract_strided_slice %214 {offsets = [0, 0], sizes = [8, 32], strides = [1, 1]} : vector<32x32xbf16> to vector<8x32xbf16>
    %cst_72 = arith.constant dense<0.000000e+00> : vector<16x32xf32>
    %221 = tpu.matmul %219, %220, %cst_72 {dimension_numbers = #tpu.dot_dimension_numbers<[1], [0], [0], [1], [0, 0, 1, 1], [], []>} : vector<16x8xbf16>, vector<8x32xbf16>, vector<16x32xf32> -> vector<16x32xf32>
    %222 = arith.addf %215, %221 : vector<16x32xf32>
    %223 = vector.extract_strided_slice %212 {offsets = [16, 0], sizes = [16, 16], strides = [1, 1]} : vector<64x16xbf16> to vector<16x16xbf16>
    %224 = vector.extract_strided_slice %187 {offsets = [0, 72], sizes = [16, 8], strides = [1, 1]} : vector<16x96xbf16> to vector<16x8xbf16>
    %cst_73 = arith.constant dense<0.000000e+00> : vector<16x8xf32>
    %225 = tpu.matmul %223, %224, %cst_73 {dimension_numbers = #tpu.dot_dimension_numbers<[1], [0], [0], [1], [0, 0, 1, 1], [], []>} : vector<16x16xbf16>, vector<16x8xbf16>, vector<16x8xf32> -> vector<16x8xf32>
    %226 = arith.truncf %225 : vector<16x8xf32> to vector<16x8xbf16>
    %227 = vector.extract_strided_slice %214 {offsets = [8, 0], sizes = [8, 32], strides = [1, 1]} : vector<32x32xbf16> to vector<8x32xbf16>
    %cst_74 = arith.constant dense<0.000000e+00> : vector<16x32xf32>
    %228 = tpu.matmul %226, %227, %cst_74 {dimension_numbers = #tpu.dot_dimension_numbers<[1], [0], [0], [1], [0, 0, 1, 1], [], []>} : vector<16x8xbf16>, vector<8x32xbf16>, vector<16x32xf32> -> vector<16x32xf32>
    %229 = arith.addf %222, %228 : vector<16x32xf32>
    %230 = vector.extract_strided_slice %212 {offsets = [32, 0], sizes = [16, 16], strides = [1, 1]} : vector<64x16xbf16> to vector<16x16xbf16>
    %231 = vector.extract_strided_slice %187 {offsets = [0, 80], sizes = [16, 8], strides = [1, 1]} : vector<16x96xbf16> to vector<16x8xbf16>
    %cst_75 = arith.constant dense<0.000000e+00> : vector<16x8xf32>
    %232 = tpu.matmul %230, %231, %cst_75 {dimension_numbers = #tpu.dot_dimension_numbers<[1], [0], [0], [1], [0, 0, 1, 1], [], []>} : vector<16x16xbf16>, vector<16x8xbf16>, vector<16x8xf32> -> vector<16x8xf32>
    %233 = arith.truncf %232 : vector<16x8xf32> to vector<16x8xbf16>
    %234 = vector.extract_strided_slice %214 {offsets = [16, 0], sizes = [8, 32], strides = [1, 1]} : vector<32x32xbf16> to vector<8x32xbf16>
    %cst_76 = arith.constant dense<0.000000e+00> : vector<16x32xf32>
    %235 = tpu.matmul %233, %234, %cst_76 {dimension_numbers = #tpu.dot_dimension_numbers<[1], [0], [0], [1], [0, 0, 1, 1], [], []>} : vector<16x8xbf16>, vector<8x32xbf16>, vector<16x32xf32> -> vector<16x32xf32>
    %236 = arith.addf %229, %235 : vector<16x32xf32>
    %237 = vector.extract_strided_slice %212 {offsets = [48, 0], sizes = [16, 16], strides = [1, 1]} : vector<64x16xbf16> to vector<16x16xbf16>
    %238 = vector.extract_strided_slice %187 {offsets = [0, 88], sizes = [16, 8], strides = [1, 1]} : vector<16x96xbf16> to vector<16x8xbf16>
    %cst_77 = arith.constant dense<0.000000e+00> : vector<16x8xf32>
    %239 = tpu.matmul %237, %238, %cst_77 {dimension_numbers = #tpu.dot_dimension_numbers<[1], [0], [0], [1], [0, 0, 1, 1], [], []>} : vector<16x16xbf16>, vector<16x8xbf16>, vector<16x8xf32> -> vector<16x8xf32>
    %240 = arith.truncf %239 : vector<16x8xf32> to vector<16x8xbf16>
    %241 = vector.extract_strided_slice %214 {offsets = [24, 0], sizes = [8, 32], strides = [1, 1]} : vector<32x32xbf16> to vector<8x32xbf16>
    %cst_78 = arith.constant dense<0.000000e+00> : vector<16x32xf32>
    %242 = tpu.matmul %240, %241, %cst_78 {dimension_numbers = #tpu.dot_dimension_numbers<[1], [0], [0], [1], [0, 0, 1, 1], [], []>} : vector<16x8xbf16>, vector<8x32xbf16>, vector<16x32xf32> -> vector<16x32xf32>
    %243 = arith.addf %236, %242 : vector<16x32xf32>
    %244 = arith.addf %152, %243 : vector<16x32xf32>
    %245 = vector.broadcast %156 : vector<1x32xf32> to vector<16x32xf32>
    %246 = arith.addf %244, %245 : vector<16x32xf32>
    %cst_79 = arith.constant dense<0.000000e+00> : vector<16xf32>
    %247 = vector.multi_reduction <add>, %246, %cst_79 [1] : vector<16x32xf32> to vector<16xf32>
    %248 = vector.shape_cast %247 : vector<16xf32> to vector<16x1xf32>
    %cst_80 = arith.constant 3.200000e+01 : f32
    %249 = vector.broadcast %cst_80 : f32 to vector<16x1xf32>
    %250 = arith.divf %248, %249 : vector<16x1xf32>
    %251 = vector.broadcast %250 : vector<16x1xf32> to vector<16x32xf32>
    %252 = arith.subf %246, %251 : vector<16x32xf32>
    %253 = arith.mulf %252, %252 : vector<16x32xf32>
    %cst_81 = arith.constant dense<0.000000e+00> : vector<16xf32>
    %254 = vector.multi_reduction <add>, %253, %cst_81 [1] : vector<16x32xf32> to vector<16xf32>
    %255 = vector.shape_cast %254 : vector<16xf32> to vector<16x1xf32>
    %cst_82 = arith.constant 3.200000e+01 : f32
    %256 = vector.broadcast %cst_82 : f32 to vector<16x1xf32>
    %257 = arith.divf %255, %256 : vector<16x1xf32>
    %cst_83 = arith.constant 9.99999974E-6 : f32
    %258 = vector.broadcast %cst_83 : f32 to vector<16x1xf32>
    %259 = arith.addf %257, %258 : vector<16x1xf32>
    %260 = math.rsqrt %259 : vector<16x1xf32>
    %261 = vector.broadcast %260 : vector<16x1xf32> to vector<16x32xf32>
    %262 = arith.mulf %252, %261 : vector<16x32xf32>
    %263 = vector.broadcast %157 : vector<1x32xf32> to vector<16x32xf32>
    %264 = arith.mulf %262, %263 : vector<16x32xf32>
    %265 = vector.broadcast %158 : vector<1x32xf32> to vector<16x32xf32>
    %266 = arith.addf %264, %265 : vector<16x32xf32>
    %267 = arith.truncf %266 : vector<16x32xf32> to vector<16x32xbf16>
    %c1_84 = arith.constant 1 : index
    %c0_85 = arith.constant 0 : index
    %c0_86 = arith.constant 0 : index
    %268 = vector.load %arg8[%c1_84, %c0_85, %c0_86] : memref<2x32x128xbf16, #tpu.memory_space<vmem>>, vector<1x32x128xbf16>
    %269 = vector.shape_cast %268 : vector<1x32x128xbf16> to vector<32x128xbf16>
    %cst_87 = arith.constant dense<0.000000e+00> : vector<16x128xf32>
    %270 = tpu.matmul %267, %269, %cst_87 {dimension_numbers = #tpu.dot_dimension_numbers<[1], [0], [0], [1], [0, 0, 1, 1], [], []>} : vector<16x32xbf16>, vector<32x128xbf16>, vector<16x128xf32> -> vector<16x128xf32>
    %271 = vector.broadcast %159 : vector<1x128xf32> to vector<16x128xf32>
    %272 = arith.addf %270, %271 : vector<16x128xf32>
    %cst_88 = arith.constant 5.000000e-01 : f32
    %273 = vector.broadcast %cst_88 : f32 to vector<16x128xf32>
    %274 = arith.mulf %273, %272 : vector<16x128xf32>
    %cst_89 = arith.constant 4.471500e-02 : f32
    %275 = vector.broadcast %cst_89 : f32 to vector<16x128xf32>
    %276 = arith.mulf %275, %272 : vector<16x128xf32>
    %277 = arith.mulf %276, %272 : vector<16x128xf32>
    %278 = arith.mulf %277, %272 : vector<16x128xf32>
    %279 = arith.addf %272, %278 : vector<16x128xf32>
    %cst_90 = arith.constant 0.797884583 : f32
    %280 = vector.broadcast %cst_90 : f32 to vector<16x128xf32>
    %281 = arith.mulf %280, %279 : vector<16x128xf32>
    %282 = math.tanh %281 : vector<16x128xf32>
    %cst_91 = arith.constant 1.000000e+00 : f32
    %283 = vector.broadcast %cst_91 : f32 to vector<16x128xf32>
    %284 = arith.addf %283, %282 : vector<16x128xf32>
    %285 = arith.mulf %274, %284 : vector<16x128xf32>
    %286 = arith.truncf %285 : vector<16x128xf32> to vector<16x128xbf16>
    %c1_92 = arith.constant 1 : index
    %c0_93 = arith.constant 0 : index
    %c0_94 = arith.constant 0 : index
    %287 = vector.load %arg9[%c1_92, %c0_93, %c0_94] : memref<2x128x32xbf16, #tpu.memory_space<vmem>>, vector<1x128x32xbf16>
    %288 = vector.shape_cast %287 : vector<1x128x32xbf16> to vector<128x32xbf16>
    %cst_95 = arith.constant dense<0.000000e+00> : vector<16x32xf32>
    %289 = tpu.matmul %286, %288, %cst_95 {dimension_numbers = #tpu.dot_dimension_numbers<[1], [0], [0], [1], [0, 0, 1, 1], [], []>} : vector<16x128xbf16>, vector<128x32xbf16>, vector<16x32xf32> -> vector<16x32xf32>
    %290 = vector.broadcast %160 : vector<1x32xf32> to vector<16x32xf32>
    %291 = arith.addf %289, %290 : vector<16x32xf32>
    %292 = arith.addf %246, %291 : vector<16x32xf32>
    %293 = vector.extract_strided_slice %0 {offsets = [16, 0], sizes = [1, 32], strides = [1, 1]} : vector<18x128xf32> to vector<1x32xf32>
    %294 = vector.extract_strided_slice %0 {offsets = [17, 0], sizes = [1, 32], strides = [1, 1]} : vector<18x128xf32> to vector<1x32xf32>
    %cst_96 = arith.constant dense<0.000000e+00> : vector<16xf32>
    %295 = vector.multi_reduction <add>, %292, %cst_96 [1] : vector<16x32xf32> to vector<16xf32>
    %296 = vector.shape_cast %295 : vector<16xf32> to vector<16x1xf32>
    %cst_97 = arith.constant 3.200000e+01 : f32
    %297 = vector.broadcast %cst_97 : f32 to vector<16x1xf32>
    %298 = arith.divf %296, %297 : vector<16x1xf32>
    %299 = vector.broadcast %298 : vector<16x1xf32> to vector<16x32xf32>
    %300 = arith.subf %292, %299 : vector<16x32xf32>
    %301 = arith.mulf %300, %300 : vector<16x32xf32>
    %cst_98 = arith.constant dense<0.000000e+00> : vector<16xf32>
    %302 = vector.multi_reduction <add>, %301, %cst_98 [1] : vector<16x32xf32> to vector<16xf32>
    %303 = vector.shape_cast %302 : vector<16xf32> to vector<16x1xf32>
    %cst_99 = arith.constant 3.200000e+01 : f32
    %304 = vector.broadcast %cst_99 : f32 to vector<16x1xf32>
    %305 = arith.divf %303, %304 : vector<16x1xf32>
    %cst_100 = arith.constant 9.99999974E-6 : f32
    %306 = vector.broadcast %cst_100 : f32 to vector<16x1xf32>
    %307 = arith.addf %305, %306 : vector<16x1xf32>
    %308 = math.rsqrt %307 : vector<16x1xf32>
    %309 = vector.broadcast %308 : vector<16x1xf32> to vector<16x32xf32>
    %310 = arith.mulf %300, %309 : vector<16x32xf32>
    %311 = vector.broadcast %293 : vector<1x32xf32> to vector<16x32xf32>
    %312 = arith.mulf %310, %311 : vector<16x32xf32>
    %313 = vector.broadcast %294 : vector<1x32xf32> to vector<16x32xf32>
    %314 = arith.addf %312, %313 : vector<16x32xf32>
    %315 = arith.truncf %314 : vector<16x32xf32> to vector<16x32xbf16>
    %c0_101 = arith.constant 0 : index
    %c0_102 = arith.constant 0 : index
    %316 = vector.load %arg5[%c0_101, %c0_102] : memref<32x128xbf16, #tpu.memory_space<vmem>>, vector<32x128xbf16>
    %cst_103 = arith.constant dense<0.000000e+00> : vector<16x128xf32>
    %317 = tpu.matmul %315, %316, %cst_103 {dimension_numbers = #tpu.dot_dimension_numbers<[1], [0], [0], [1], [0, 0, 1, 1], [], []>} : vector<16x32xbf16>, vector<32x128xbf16>, vector<16x128xf32> -> vector<16x128xf32>
    %c0_104 = arith.constant 0 : index
    %c0_105 = arith.constant 0 : index
    %318 = vector.load %arg10[%c0_104, %c0_105] : memref<16x128xf32, #tpu.memory_space<vmem>>, vector<16x128xf32>
    tpu.vector_store %arg10[%c0_104, %c0_105], %317 {strides = array<i32>} : memref<16x128xf32, #tpu.memory_space<vmem>>, vector<16x128xf32>,
    return
  }
}

</mosaic_0001>

<bundles_post_ra>
// kernel: tpu_custom_call.1
= control target key start
LH: loop header
LB: loop body
LE: loop exit
PB: predicated region body
PF: predicated region fallthrough
CT: control target
= control target key end

     0   :  { %v2918_v1 = vmov 0   ;;  %v2919_v2 = vmov 0.0   ;;  %vm2920_vm0 = vmmov 0   ;;  %s3580_s0 = inlined_call_operand.vmem [shape: s32[16,1], index: 0, kind: input, shape index: {}]   ;;  %s3581_s1 = inlined_call_operand.vmem [shape: f32[16,32], index: 1, kind: input, shape index: {}]   ;;  %s3582_s2 = inlined_call_operand.vmem [shape: f32[64,16], index: 2, kind: input, shape index: {}]   ;;  %s3583_s3 = inlined_call_operand.vmem [shape: f32[18,128], index: 3, kind: input, shape index: {}]   ;;  %s3584_s4 = inlined_call_operand.vmem [shape: bf16[64,32], index: 4, kind: input, shape index: {}]   ;;  %s3585_s5 = inlined_call_operand.vmem [shape: bf16[32,128], index: 5, kind: input, shape index: {}]   ;;  %s3586_s6 = inlined_call_operand.vmem [shape: bf16[2,32,96], index: 6, kind: input, shape index: {}]   ;;  %s3587_s7 = inlined_call_operand.vmem [shape: bf16[2,32,32], index: 7, kind: input, shape index: {}]   ;;  %s3588_s8 = inlined_call_operand.vmem [shape: bf16[2,32,128], index: 8, kind: input, shape index: {}]   ;;  %s3589_s9 = inlined_call_operand.vmem [shape: bf16[2,128,32], index: 9, kind: input, shape index: {}]   ;;  %s3590_s10 = inlined_call_operand.hbm [shape: f32[16,128], index: 10, kind: output, shape index: {}]  }
   0x1   :  { %v42_v0 = vld [vmem:[%s3580_s0] sm:$0xff]  ;;  %2771 = vset.pattern.permute.xlu0 %v2918_v1  ;;  %2518 = vmatprep.subr.bf16.mxu1 %v2919_v2  ;;  %v43_v4 = vld [vmem:[%s3580_s0 + $0x8] sm:$0xff]  ;;  %v2774_v6 = vld [vmem:[%s3584_s4 + $0x10] sm:$0xff]  }
   0x2   :  { %v2772_v3 = vld [vmem:[%s3584_s4] sm:$0xff]   ;;  %45 = vperm.xlu0 %2771, %v42_v0   ;;  %2544 = vmatprep.subr.bf16.mxu0 %v2919_v2  ;;  %v2773_v5 = vld [vmem:[%s3584_s4 + $0x8] sm:$0xff]   ;;  %v2775_v7 = vld [vmem:[%s3584_s4 + $0x18] sm:$0xff]  }
   0x3   :  { %2519 = vmatpush3.bf16.msra.mxu1 %v2772_v3  ;;  %2526 = vmatprep.mubr.msk.bf16.mxu1 %vm2920_vm0, %v2919_v2 }
   0x4   :  { %2520 = vmatprep.subr.bf16.mxu1 %v2919_v2  ;;  %2546 = vmatprep.mubr.msk.bf16.mxu0 %vm2920_vm0, %v2919_v2 }
   0x6   :  { %48 = vperm.xlu0 %2771, %v43_v4  }
   0x7   :  { %2521 = vmatpush3.bf16.msra.mxu1 %v2773_v5 }
   0x8   :  { %2522 = vmatprep.subr.bf16.mxu1 %v2919_v2 }
   0xb   :  { %2523 = vmatpush3.bf16.msra.mxu1 %v2774_v6 }
   0xc   :  { %2524 = vmatprep.subr.bf16.mxu1 %v2919_v2 }
   0xf   :  { %2525 = vmatpush3.bf16.msra.mxu1 %v2775_v7 }
  0x10   :  { %2530 = vmatprep.subr.bf16.mxu1 %v2919_v2 }
  0x11   :  { %15 = vsyncpa [#allocation3], 0  ;;  %v40_v8 = vlaneseq  ;;  %vm91_vm3 = vcmask 523264   ;;  %v65_v15 = vld [vmem:[%s3581_s1] sm:$0xff]  ;;  %v66_v17 = vld [vmem:[%s3581_s1 + $0x8] sm:$0xff]  ;;  %vm144_vm4 = vcmask 261120  }
  0x12   :  { %v2776_v35 = vld [vmem:[%s3586_s6] sm:$0xff]   ;;  %v2777_v36 = vld [vmem:[%s3586_s6 + $0x8] sm:$0xff]   ;;  %s2921_s12 = smov 112   ;;  %s2922_s13 = smov 88   ;;  %vm253_vm5 = vcmask 64512   ;;  %vm462_vm6 = vcmask 130048  }
  0x13   :  { %v41_v9 = vand.u32 127, %v40_v8  ;;  %v3048_v43 = vshrl.u32 %v40_v8, 7  ;;  %v3056_v45 = vld [vmem:[%s3583_s3] sm:$0xff]  ;;  %s2923_s14 = smov 120   ;;  %s2924_s15 = smov 96   ;;  %vm658_vm7 = vcmask 1043456  }
  0x14   :  { %s2925_s16 = smov 80   ;;  %s2926_s17 = smov 72  }
  0x15   :  { %v3051_v44 = vsub.s32 0, %v3048_v43  ;;  %v3061_v49 = vsub.s32 1, %v3048_v43  ;;  %v191_v58 = vsub.s32 2, %v3048_v43  ;;  %s2927_s18 = smov 104   ;;  %s2928_s0 = smov 56  }
  0x16   :  { %s2929_s20 = smov 64   ;;  %s2931_s21 = smov 40  }
  0x17   :  { %v175_v48 = vrot.slane %v3056_v45, %v3051_v44  ;;  %v181_v53 = vrot.slane %v3056_v45, %v3061_v49  ;;  %v192_v59 = vrot.slane %v3056_v45, %v191_v58 }
  0x81   :  { %v46_v10 = vpop.permute.xlu0 %45 }
  0x82   :  { %vm50_vm1 = vcmp.eq.s32.totalorder %v41_v9, %v46_v10 }
  0x83   :  { %v2342_v12 = vsel %vm50_vm1, 1.0, %v2919_v2 }
  0x85   :  { %v49_v11 = vpop.permute.xlu0 %48 }
  0x86   :  { %vm51_vm2 = vcmp.eq.s32.totalorder %v41_v9, %v49_v11 }
  0x87   :  { %v2343_v13 = vsel %vm51_vm2, 1.0, %v2919_v2 }
  0x88   :  { %v56_v14 = vpack.c.bf16 %v2343_v13, %v2342_v12 }
  0x8a   :  { %2527 = vmatmul.mubr.msk.bf16.vlgmr.msra.gmra.mrb[0].mxu1 %vm91_vm3, %v56_v14 }
  0x8b   :  { %2534 = vmatprep.mubr.msk.bf16.mxu1 %vm2920_vm0, %v2919_v2  ;;  %2531 = vmatpush3.bf16.msra.mxu1 %v2776_v35 }
  0x8c   :  { %2532 = vmatprep.subr.bf16.mxu1 %v2919_v2 }
  0x8f   :  { %2533 = vmatpush3.bf16.msra.mxu1 %v2777_v36 }
  0x90   :  { %2538 = vmatprep.subr.bf16.mxu1 %v2919_v2 }
 0x15d   :  { %v129_v16 = vpop.f32.mrb[0].mxu1 }
 0x15e   :  { %v3028_v18 = vadd.f32 %v129_v16, %v65_v15  ;;  %v2528_v19 = vpop.f32.mrb[1].mxu1  ;;  %v3112_v15 = vld [vmem:[%s3582_s2 + $0x10] sm:$0xff] }
 0x15f   :  { %v132_v20 = vpop.f32.mrb[2].mxu1 }
 0x160   :  { %v3030_v21 = vadd.f32 %v132_v20, %v66_v17  ;;  %v2529_v22 = vpop.f32.mrb[3].mxu1  ;;  %v145_v23 = vsel %vm144_vm4, %v3028_v18, 0.0  ;;  %v3117_v17 = vld [vmem:[%s3582_s2 + $0x18] sm:$0xff] }
 0x161   :  { %146 = vadd.xlane.f32.xlu1 %v145_v23 }
 0x162   :  { %v148_v24 = vsel %vm144_vm4, %v3030_v21, 0.0 }
 0x165   :  { %149 = vadd.xlane.f32.xlu1 %v148_v24 }
 0x1ee   :  { %v147_v25 = vpop.xlane.xlu1 %146 }
 0x1ef   :  { %v152_v26 = vmul.f32 0.03125, %v147_v25 }
 0x1f1   :  { %v154_v27 = vsub.f32 %v3028_v18, %v152_v26 }
 0x1f2   :  { %v150_v28 = vpop.xlane.xlu1 %149 }
 0x1f3   :  { %v153_v29 = vmul.f32 0.03125, %v150_v28  ;;  %v156_v30 = vmul.f32 %v154_v27, %v154_v27 }
 0x1f5   :  { %v155_v31 = vsub.f32 %v3030_v21, %v153_v29  ;;  %v158_v32 = vsel %vm144_vm4, %v156_v30, 0.0 }
 0x1f6   :  { %159 = vadd.xlane.f32.xlu0 %v158_v32 }
 0x1f7   :  { %v157_v33 = vmul.f32 %v155_v31, %v155_v31 }
 0x1f9   :  { %v161_v34 = vsel %vm144_vm4, %v157_v33, 0.0 }
 0x1fa   :  { %162 = vadd.xlane.f32.xlu1 %v161_v34 }
 0x283   :  { %v160_v37 = vpop.xlane.xlu0 %159 }
 0x284   :  { %v164_v38 = vmul.f32 0.03125, %v160_v37 }
 0x286   :  { %v166_v39 = vadd.f32 1e-05, %v164_v38 }
 0x287   :  { %v163_v40 = vpop.xlane.xlu1 %162 }
 0x288   :  { %2802 = vrsqrt.f32 %v166_v39  ;;  %v165_v41 = vmul.f32 0.03125, %v163_v40 }
 0x28a   :  { %v167_v42 = vadd.f32 1e-05, %v165_v41 }
 0x28c   :  { %2804 = vrsqrt.f32 %v167_v42 }
 0x292   :  { %v2803_v46 = vpop.eup %2802 }
 0x293   :  { %v170_v47 = vmul.f32 %v2803_v46, %v154_v27 }
 0x295   :  { %v176_v51 = vmul.f32 %v175_v48, %v170_v47 }
 0x296   :  { %v2805_v50 = vpop.eup %2804 }
 0x297   :  { %v171_v52 = vmul.f32 %v2805_v50, %v155_v31  ;;  %v182_v55 = vadd.f32 %v181_v53, %v176_v51 }
 0x299   :  { %v177_v54 = vmul.f32 %v175_v48, %v171_v52 }
 0x29b   :  { %v183_v56 = vadd.f32 %v181_v53, %v177_v54  ;;  %v3130_v53 = vld [vmem:[%s3582_s2] sm:$0xff] }
 0x29d   :  { %v184_v57 = vpack.c.bf16 %v183_v56, %v182_v55  ;;  %v3137_v56 = vld [vmem:[%s3582_s2 + $0x8] sm:$0xff] }
 0x29f   :  { %2535 = vmatmul.mubr.msk.bf16.vlgmr.msra.gmra.mrb[4].mxu1 %vm144_vm4, %v184_v57 }
 0x2a0   :  { %2540 = vmatprep.mubr.msk.bf16.mxu1 %vm2920_vm0, %v2919_v2 }
 0x372   :  { %v242_v60 = vpop.f32.mrb[4].mxu1 }
 0x373   :  { %v2536_v61 = vpop.f32.mrb[5].mxu1  ;;  %v243_v63 = vadd.f32 %v242_v60, %v192_v59  ;;  %v3144_v60 = vld [vmem:[%s3582_s2 + $0x20] sm:$0xff] }
 0x374   :  { %v245_v62 = vpop.f32.mrb[6].mxu1 }
 0x375   :  { %v246_v0 = vadd.f32 %v245_v62, %v192_v59  ;;  %v2537_v1 = vpop.f32.mrb[7].mxu1 }
 0x377   :  { %v3072_v3 = vpack.c.bf16 %v246_v0, %v243_v63  ;;  %v3151_v63 = vld [vmem:[%s3582_s2 + $0x28] sm:$0xff] }
 0x379   :  { %352 = vrot.lane.b32.xlu0 %v3072_v3, %s2921_s12  ;;  %303 = vrot.lane.b32.xlu1 %v3072_v3, %s2922_s13 }
 0x37d   :  { %301 = vrot.lane.b32.xlu1 %v3072_v3, %s2923_s14 }
 0x381   :  { %251 = vrot.lane.b32.xlu1 %v3072_v3, %s2924_s15 }
 0x385   :  { %354 = vrot.lane.b32.xlu1 %v3072_v3, %s2925_s16 }
 0x389   :  { %405 = vrot.lane.b32.xlu1 %v3072_v3, %s2926_s17 }
 0x38d   :  { %403 = vrot.lane.b32.xlu1 %v3072_v3, %s2927_s18 }
 0x3eb   :  { %v304_v4 = vpop.permute.xlu1 %303  ;;  %v353_v13 = vpop.permute.xlu0 %352 }
 0x3ec   :  { %v309_v5 = vsel %vm253_vm5, %v304_v4, 0  ;;  %v3158_v4 = vld [vmem:[%s3582_s2 + $0x30] sm:$0xff] }
 0x3ed   :  { %2545 = vmatpush3.bf16.xpose.msra.mxu0 %v309_v5 }
 0x3ee   :  { %2556 = vmatprep.subr.bf16.mxu0 %v2919_v2 }
 0x3ef   :  { %v302_v6 = vpop.permute.xlu1 %301 }
 0x3f3   :  { %v252_v7 = vpop.permute.xlu1 %251 }
 0x3f4   :  { %v258_v8 = vsel %vm253_vm5, %v252_v7, 0  ;;  %2547 = vmatmul.mubr.msk.bf16.vlgmr.msra.gmra.mrb[0].mxu0 %vm253_vm5, %v302_v6  ;;  %v3165_v7 = vld [vmem:[%s3582_s2 + $0x38] sm:$0xff]  ;;  %s2930_s2 = smov 48  }
 0x3f5   :  { %2539 = vmatpush3.bf16.xpose.msra.mxu1 %v258_v8  ;;  %2558 = vmatprep.mubr.msk.bf16.mxu0 %vm2920_vm0, %v2919_v2 }
 0x3f6   :  { %2550 = vmatprep.subr.bf16.mxu1 %v2919_v2 }
 0x3f7   :  { %v355_v9 = vpop.permute.xlu1 %354 }
 0x3f8   :  { %v360_v11 = vsel %vm253_vm5, %v355_v9, 0 }
 0x3fb   :  { %v406_v10 = vpop.permute.xlu1 %405 }
 0x3fc   :  { %v411_v12 = vsel %vm253_vm5, %v406_v10, 0  ;;  %2541 = vmatmul.mubr.msk.bf16.vlgmr.msra.gmra.mrb[8].mxu1 %vm253_vm5, %v3072_v3 }
 0x3fd   :  { %2551 = vmatpush3.bf16.xpose.msra.mxu1 %v360_v11  ;;  %2557 = vmatpush3.bf16.xpose.msra.mxu0 %v411_v12 }
 0x3fe   :  { %2552 = vmatprep.mubr.msk.bf16.mxu1 %vm2920_vm0, %v2919_v2  ;;  %2568 = vmatprep.subr.bf16.mxu0 %v2919_v2 }
 0x3ff   :  { %2562 = vmatprep.subr.bf16.mxu1 %v2919_v2  ;;  %v404_v14 = vpop.permute.xlu1 %403 }
 0x404   :  { %2553 = vmatmul.mubr.msk.bf16.vlgmr.msra.gmra.mrb[12].mxu1 %vm253_vm5, %v353_v13  ;;  %2559 = vmatmul.mubr.msk.bf16.vlgmr.msra.gmra.mrb[4].mxu0 %vm253_vm5, %v404_v14 }
 0x405   :  { %2570 = vmatprep.mubr.msk.bf16.mxu0 %vm2920_vm0, %v2919_v2  ;;  %2564 = vmatprep.mubr.msk.bf16.mxu1 %vm2920_vm0, %v2919_v2 }
 0x4c7   :  { %v345_v16 = vpop.f32.mrb[0].mxu0 }
 0x4c8   :  { %v456_v19 = vadd.f32 %v345_v16, %v3112_v15  ;;  %v2548_v20 = vpop.f32.mrb[1].mxu0 }
 0x4c9   :  { %v348_v22 = vpop.f32.mrb[2].mxu0 }
 0x4ca   :  { %v457_v23 = vadd.f32 %v348_v22, %v3117_v17  ;;  %v2549_v24 = vpop.f32.mrb[3].mxu0  ;;  %v469_v25 = vsel %vm462_vm6, %v456_v19, -inf }
 0x4cb   :  { %470 = vmax.xlane.f32.xlu1 %v469_v25 }
 0x4cc   :  { %v472_v26 = vsel %vm462_vm6, %v457_v23, -inf }
 0x4cd   :  { %473 = vmax.xlane.f32.xlu0 %v472_v26 }
 0x4cf   :  { %v294_v27 = vpop.f32.mrb[8].mxu1 }
 0x4d0   :  { %v2542_v28 = vpop.f32.mrb[9].mxu1  ;;  %v454_v54 = vadd.f32 %v294_v27, %v3130_v53 }
 0x4d1   :  { %v297_v29 = vpop.f32.mrb[10].mxu1 }
 0x4d2   :  { %v2543_v30 = vpop.f32.mrb[11].mxu1  ;;  %v455_v57 = vadd.f32 %v297_v29, %v3137_v56  ;;  %v463_v59 = vsel %vm462_vm6, %v454_v54, -inf }
 0x4d4   :  { %v466_v62 = vsel %vm462_vm6, %v455_v57, -inf }
 0x4d7   :  { %v396_v31 = vpop.f32.mrb[12].mxu1  ;;  %v447_v32 = vpop.f32.mrb[4].mxu0 }
 0x4d8   :  { %v2554_v33 = vpop.f32.mrb[13].mxu1  ;;  %v2560_v34 = vpop.f32.mrb[5].mxu0  ;;  %v458_v61 = vadd.f32 %v396_v31, %v3144_v60  ;;  %v460_v5 = vadd.f32 %v447_v32, %v3158_v4 }
 0x4d9   :  { %v399_v35 = vpop.f32.mrb[14].mxu1  ;;  %v450_v36 = vpop.f32.mrb[6].mxu0 }
 0x4da   :  { %v2555_v37 = vpop.f32.mrb[15].mxu1  ;;  %v2561_v38 = vpop.f32.mrb[7].mxu0  ;;  %v459_v0 = vadd.f32 %v399_v35, %v3151_v63  ;;  %v475_v1 = vsel %vm462_vm6, %v458_v61, -inf  ;;  %v461_v8 = vadd.f32 %v450_v36, %v3165_v7  ;;  %v481_v9 = vsel %vm462_vm6, %v460_v5, -inf }
 0x4dc   :  { %v478_v6 = vsel %vm462_vm6, %v459_v0, -inf  ;;  %v484_v10 = vsel %vm462_vm6, %v461_v8, -inf }
 0x4e3   :  { %607 = vrot.lane.b32.xlu0 %v3072_v3, %s2928_s0 }
 0x558   :  { %v471_v39 = vpop.xlane.xlu1 %470 }
 0x559   :  { %v489_v40 = vsub.f32 %v456_v19, %v471_v39 }
 0x55a   :  { %v474_v41 = vpop.xlane.xlu0 %473 }
 0x55b   :  { %v499_v42 = vmul.f32 1.442695, %v489_v40  ;;  %v490_v46 = vsub.f32 %v457_v23, %v474_v41 }
 0x55d   :  { %2806 = vpow2.f32 %v499_v42  ;;  %v501_v47 = vmul.f32 1.442695, %v490_v46 }
 0x55e   :  { %v608_v48 = vpop.permute.xlu0 %607 }
 0x55f   :  { %2808 = vpow2.f32 %v501_v47  ;;  %2569 = vmatpush3.bf16.msra.mxu0 %v608_v48 }
 0x560   :  { %2580 = vmatprep.subr.bf16.mxu0 %v2919_v2 }
 0x567   :  { %v2807_v50 = vpop.eup %2806 }
 0x568   :  { %v517_v51 = vsel %vm462_vm6, %v2807_v50, 0.0 }
 0x569   :  { %v2809_v52 = vpop.eup %2808  ;;  %518 = vadd.xlane.f32.xlu1 %v517_v51 }
 0x56a   :  { %v520_v55 = vsel %vm462_vm6, %v2809_v52, 0.0 }
 0x56d   :  { %521 = vadd.xlane.f32.xlu1 %v520_v55 }
 0x571   :  { %464 = vmax.xlane.f32.xlu1 %v463_v59 }
 0x575   :  { %467 = vmax.xlane.f32.xlu1 %v466_v62 }
 0x579   :  { %476 = vmax.xlane.f32.xlu1 %v475_v1 }
 0x57d   :  { %479 = vmax.xlane.f32.xlu1 %v478_v6 }
 0x581   :  { %482 = vmax.xlane.f32.xlu1 %v481_v9 }
 0x585   :  { %485 = vmax.xlane.f32.xlu1 %v484_v10 }
 0x596   :  { %559 = vrot.lane.b32.xlu1 %v3072_v3, %s2929_s20 }
 0x5f6   :  { %v519_v11 = vpop.xlane.xlu1 %518 }
 0x5f7   :  { %2810 = vrcp.f32 %v519_v11 }
 0x5fa   :  { %v522_v12 = vpop.xlane.xlu1 %521 }
 0x5fb   :  { %2812 = vrcp.f32 %v522_v12 }
 0x5fe   :  { %v465_v13 = vpop.xlane.xlu1 %464 }
 0x5ff   :  { %v487_v14 = vsub.f32 %v454_v54, %v465_v13 }
 0x601   :  { %v495_v16 = vmul.f32 1.442695, %v487_v14  ;;  %v2811_v20 = vpop.eup %2810 }
 0x602   :  { %v468_v19 = vpop.xlane.xlu1 %467  ;;  %v545_v25 = vmul.f32 %v2811_v20, %v2807_v50 }
 0x603   :  { %2814 = vpow2.f32 %v495_v16  ;;  %v488_v22 = vsub.f32 %v455_v57, %v468_v19 }
 0x605   :  { %v2813_v23 = vpop.eup %2812  ;;  %v497_v24 = vmul.f32 1.442695, %v488_v22 }
 0x606   :  { %v546_v26 = vmul.f32 %v2813_v23, %v2809_v52  ;;  %v477_v27 = vpop.xlane.xlu1 %476 }
 0x607   :  { %2816 = vpow2.f32 %v497_v24  ;;  %v491_v28 = vsub.f32 %v458_v61, %v477_v27 }
 0x608   :  { %v552_v29 = vpack.c.bf16 %v546_v26, %v545_v25 }
 0x609   :  { %v503_v30 = vmul.f32 1.442695, %v491_v28 }
 0x60a   :  { %2571 = vmatmul.mubr.msk.bf16.vlgmr.msra.gmra.mrb[8].mxu0 %vm462_vm6, %v552_v29  ;;  %v480_v31 = vpop.xlane.xlu1 %479 }
 0x60b   :  { %2818 = vpow2.f32 %v503_v30  ;;  %2582 = vmatprep.mubr.msk.bf16.mxu0 %vm2920_vm0, %v2919_v2  ;;  %v492_v33 = vsub.f32 %v459_v0, %v480_v31 }
 0x60d   :  { %v2815_v32 = vpop.eup %2814  ;;  %v505_v38 = vmul.f32 1.442695, %v492_v33 }
 0x60e   :  { %v483_v34 = vpop.xlane.xlu1 %482  ;;  %v511_v35 = vsel %vm462_vm6, %v2815_v32, 0.0 }
 0x60f   :  { %v493_v36 = vsub.f32 %v460_v5, %v483_v34  ;;  %512 = vadd.xlane.f32.xlu0 %v511_v35  ;;  %v556_v5 = vld [vmem:[%s3587_s7 + $0x4] sm:$0xf]  ;;  %v555_v35 = vld [vmem:[%s3587_s7] sm:$0xf] }
 0x610   :  { %v660_v10 = vsel %vm658_vm7, %v556_v5, 0 }
 0x611   :  { %v2817_v37 = vpop.eup %2816  ;;  %v507_v39 = vmul.f32 1.442695, %v493_v36  ;;  %v707_v36 = vsel %vm658_vm7, %v555_v35, 0 }
 0x612   :  { %v486_v40 = vpop.xlane.xlu1 %485  ;;  %v514_v41 = vsel %vm462_vm6, %v2817_v37, 0.0  ;;  %2581 = vmatpush3.bf16.msra.mxu0 %v707_v36 }
 0x613   :  { %2820 = vpow2.f32 %v507_v39  ;;  %v494_v42 = vsub.f32 %v461_v8, %v486_v40  ;;  %515 = vadd.xlane.f32.xlu1 %v514_v41  ;;  %2592 = vmatprep.subr.bf16.mxu0 %v2919_v2 }
 0x614   :  { %2822 = vpow2.f32 %v505_v38  ;;  %v557_v38 = vld [vmem:[%s3587_s7 + $0x8] sm:$0xf] }
 0x615   :  { %v2819_v46 = vpop.eup %2818  ;;  %v509_v47 = vmul.f32 1.442695, %v494_v42 }
 0x616   :  { %v560_v48 = vpop.permute.xlu1 %559  ;;  %v523_v50 = vsel %vm462_vm6, %v2819_v46, 0.0 }
 0x617   :  { %524 = vadd.xlane.f32.xlu1 %v523_v50  ;;  %2563 = vmatpush3.bf16.msra.mxu1 %v560_v48  ;;  %2824 = vpow2.f32 %v509_v47 }
 0x618   :  { %2574 = vmatprep.subr.bf16.mxu1 %v2919_v2 }
 0x61d   :  { %v2821_v51 = vpop.eup %2820 }
 0x61e   :  { %v529_v52 = vsel %vm462_vm6, %v2821_v51, 0.0  ;;  %v2823_v54 = vpop.eup %2822 }
 0x61f   :  { %530 = vadd.xlane.f32.xlu1 %v529_v52  ;;  %v526_v55 = vsel %vm462_vm6, %v2823_v54, 0.0 }
 0x621   :  { %v2825_v57 = vpop.eup %2824 }
 0x622   :  { %v532_v59 = vsel %vm462_vm6, %v2825_v57, 0.0 }
 0x623   :  { %527 = vadd.xlane.f32.xlu1 %v526_v55 }
 0x625   :  { %750 = vrot.lane.b32.xlu0 %v3072_v3, %s2930_s2 }
 0x627   :  { %533 = vadd.xlane.f32.xlu1 %v532_v59 }
 0x638   :  { %847 = vrot.lane.b32.xlu1 %v3072_v3, %s2931_s21 }
 0x69c   :  { %v513_v61 = vpop.xlane.xlu0 %512 }
 0x69d   :  { %2826 = vrcp.f32 %v513_v61 }
 0x6a0   :  { %v516_v62 = vpop.xlane.xlu1 %515  ;;  %v751_v24 = vpop.permute.xlu0 %750 }
 0x6a1   :  { %2828 = vrcp.f32 %v516_v62 }
 0x6a4   :  { %v525_v3 = vpop.xlane.xlu1 %524 }
 0x6a7   :  { %v2827_v0 = vpop.eup %2826 }
 0x6a8   :  { %v543_v6 = vmul.f32 %v2827_v0, %v2815_v32 }
 0x6ab   :  { %v2829_v1 = vpop.eup %2828 }
 0x6ac   :  { %v544_v8 = vmul.f32 %v2829_v1, %v2817_v37  ;;  %v531_v11 = vpop.xlane.xlu1 %530 }
 0x6ae   :  { %v551_v9 = vpack.c.bf16 %v544_v8, %v543_v6 }
 0x6b0   :  { %2565 = vmatmul.mubr.msk.bf16.vlgmr.msra.gmra.mrb[16].mxu1 %vm462_vm6, %v551_v9  ;;  %v528_v12 = vpop.xlane.xlu1 %527 }
 0x6b1   :  { %2575 = vmatpush3.bf16.msra.mxu1 %v660_v10  ;;  %2576 = vmatprep.mubr.msk.bf16.mxu1 %vm2920_vm0, %v2919_v2  ;;  %2830 = vrcp.f32 %v528_v12 }
 0x6b2   :  { %2586 = vmatprep.subr.bf16.mxu1 %v2919_v2  ;;  %2832 = vrcp.f32 %v525_v3 }
 0x6b4   :  { %v534_v13 = vpop.xlane.xlu1 %533 }
 0x6b5   :  { %2834 = vrcp.f32 %v534_v13 }
 0x6b6   :  { %2836 = vrcp.f32 %v531_v11 }
 0x6b8   :  { %v848_v30 = vpop.permute.xlu1 %847 }
 0x6bb   :  { %v2831_v23 = vpop.eup %2830 }
 0x6bc   :  { %v2833_v25 = vpop.eup %2832  ;;  %v548_v26 = vmul.f32 %v2831_v23, %v2823_v54  ;;  %v558_v54 = vld [vmem:[%s3587_s7 + $0xc] sm:$0xf] }
 0x6bd   :  { %v547_v27 = vmul.f32 %v2833_v25, %v2819_v46  ;;  %v802_v46 = vsel %vm658_vm7, %v557_v38, 0  ;;  %v899_v62 = vsel %vm658_vm7, %v558_v54, 0 }
 0x6bf   :  { %v553_v28 = vpack.c.bf16 %v548_v26, %v547_v27  ;;  %v2835_v29 = vpop.eup %2834 }
 0x6c0   :  { %v2837_v31 = vpop.eup %2836  ;;  %v550_v32 = vmul.f32 %v2835_v29, %v2825_v57 }
 0x6c1   :  { %v549_v33 = vmul.f32 %v2837_v31, %v2821_v51 }
 0x6c3   :  { %v554_v34 = vpack.c.bf16 %v550_v32, %v549_v33 }
 0x6dd   :  { %v647_v14 = vpop.f32.mrb[8].mxu0 }
 0x6de   :  { %v2572_v16 = vpop.f32.mrb[9].mxu0 }
 0x6df   :  { %v650_v19 = vpop.f32.mrb[10].mxu0 }
 0x6e0   :  { %v654_v20 = vpack.c.bf16 %v650_v19, %v647_v14  ;;  %v2573_v22 = vpop.f32.mrb[11].mxu0 }
 0x6e2   :  { %2577 = vmatmul.mubr.msk.bf16.vlgmr.msra.gmra.mrb[20].mxu1 %vm253_vm5, %v654_v20 }
 0x6e3   :  { %2587 = vmatpush3.bf16.msra.mxu1 %v751_v24  ;;  %2588 = vmatprep.mubr.msk.bf16.mxu1 %vm2920_vm0, %v2919_v2  ;;  %v948_v24 = vsub.s32 3, %v3048_v43 }
 0x6e4   :  { %2598 = vmatprep.subr.bf16.mxu1 %v2919_v2 }
 0x6e5   :  { %v949_v27 = vrot.slane %v3056_v45, %v948_v24 }
 0x6ea   :  { %2589 = vmatmul.mubr.msk.bf16.vlgmr.msra.gmra.mrb[24].mxu1 %vm462_vm6, %v553_v28 }
 0x6eb   :  { %2599 = vmatpush3.bf16.msra.mxu1 %v848_v30  ;;  %2600 = vmatprep.mubr.msk.bf16.mxu1 %vm2920_vm0, %v2919_v2 }
 0x6ec   :  { %2610 = vmatprep.subr.bf16.mxu1 %v2919_v2 }
 0x6f2   :  { %2601 = vmatmul.mubr.msk.bf16.vlgmr.msra.gmra.mrb[28].mxu1 %vm462_vm6, %v554_v34 }
 0x6f3   :  { %2614 = vmatprep.mubr.msk.bf16.mxu1 %vm2920_vm0, %v2919_v2 }
 0x783   :  { %v599_v37 = vpop.f32.mrb[16].mxu1 }
 0x784   :  { %v2566_v39 = vpop.f32.mrb[17].mxu1 }
 0x785   :  { %v602_v40 = vpop.f32.mrb[18].mxu1 }
 0x786   :  { %v606_v41 = vpack.c.bf16 %v602_v40, %v599_v37  ;;  %v2567_v42 = vpop.f32.mrb[19].mxu1 }
 0x788   :  { %2583 = vmatmul.mubr.msk.bf16.vlgmr.msra.gmra.mrb[12].mxu0 %vm253_vm5, %v606_v41 }
 0x789   :  { %2593 = vmatpush3.bf16.msra.mxu0 %v802_v46  ;;  %2594 = vmatprep.mubr.msk.bf16.mxu0 %vm2920_vm0, %v2919_v2 }
 0x78a   :  { %2604 = vmatprep.subr.bf16.mxu0 %v2919_v2 }
 0x7b5   :  { %v696_v47 = vpop.f32.mrb[20].mxu1 }
 0x7b6   :  { %v2578_v48 = vpop.f32.mrb[21].mxu1 }
 0x7b7   :  { %v699_v50 = vpop.f32.mrb[22].mxu1 }
 0x7b8   :  { %v2579_v51 = vpop.f32.mrb[23].mxu1 }
 0x7b9   :  { %v2779_v51 = vld [vmem:[%s3588_s8 + $0x8] sm:$0xff]  }
 0x7bd   :  { %v790_v52 = vpop.f32.mrb[24].mxu1 }
 0x7be   :  { %v2590_v55 = vpop.f32.mrb[25].mxu1 }
 0x7bf   :  { %v793_v57 = vpop.f32.mrb[26].mxu1 }
 0x7c0   :  { %v797_v59 = vpack.c.bf16 %v793_v57, %v790_v52  ;;  %v2591_v61 = vpop.f32.mrb[27].mxu1 }
 0x7c2   :  { %2595 = vmatmul.mubr.msk.bf16.vlgmr.msra.gmra.mrb[16].mxu0 %vm253_vm5, %v797_v59 }
 0x7c3   :  { %2605 = vmatpush3.bf16.msra.mxu0 %v899_v62  ;;  %2606 = vmatprep.mubr.msk.bf16.mxu0 %vm2920_vm0, %v2919_v2  ;;  %v980_v62 = vsub.s32 4, %v3048_v43 }
 0x7c4   :  { %2618 = vmatprep.subr.bf16.mxu0 %v2919_v2 }
 0x7c5   :  { %v887_v0 = vpop.f32.mrb[28].mxu1 }
 0x7c6   :  { %v2602_v1 = vpop.f32.mrb[29].mxu1 }
 0x7c7   :  { %v890_v5 = vpop.f32.mrb[30].mxu1  ;;  %v986_v1 = vsub.s32 5, %v3048_v43 }
 0x7c8   :  { %v894_v6 = vpack.c.bf16 %v890_v5, %v887_v0  ;;  %v2603_v8 = vpop.f32.mrb[31].mxu1  ;;  %v981_v0 = vrot.slane %v3056_v45, %v980_v62 }
 0x7ca   :  { %2607 = vmatmul.mubr.msk.bf16.vlgmr.msra.gmra.mrb[20].mxu0 %vm253_vm5, %v894_v6 }
 0x7cb   :  { %2634 = vmatprep.mubr.msk.bf16.mxu0 %vm2920_vm0, %v2919_v2 }
 0x85b   :  { %v743_v9 = vpop.f32.mrb[12].mxu0 }
 0x85c   :  { %v744_v10 = vadd.f32 %v743_v9, %v696_v47  ;;  %v2584_v3 = vpop.f32.mrb[13].mxu0 }
 0x85d   :  { %v746_v11 = vpop.f32.mrb[14].mxu0  ;;  %v987_v3 = vrot.slane %v3056_v45, %v986_v1 }
 0x85e   :  { %v747_v12 = vadd.f32 %v746_v11, %v699_v50  ;;  %v2585_v13 = vpop.f32.mrb[15].mxu0  ;;  %v2778_v50 = vld [vmem:[%s3588_s8] sm:$0xff]  }
 0x85f   :  { %2611 = vmatpush3.bf16.msra.mxu1 %v2778_v50 }
 0x860   :  { %2612 = vmatprep.subr.bf16.mxu1 %v2919_v2 }
 0x863   :  { %2613 = vmatpush3.bf16.msra.mxu1 %v2779_v51 }
 0x864   :  { %2638 = vmatprep.subr.bf16.mxu1 %v2919_v2 }
 0x895   :  { %v838_v14 = vpop.f32.mrb[16].mxu0 }
 0x896   :  { %v845_v16 = vadd.f32 %v838_v14, %v744_v10  ;;  %v2596_v19 = vpop.f32.mrb[17].mxu0 }
 0x897   :  { %v841_v20 = vpop.f32.mrb[18].mxu0  ;;  %v2781_v19 = vld [vmem:[%s3589_s9 + $0x8] sm:$0xff]  }
 0x898   :  { %v846_v22 = vadd.f32 %v841_v20, %v747_v12  ;;  %v2597_v23 = vpop.f32.mrb[19].mxu0  ;;  %v2782_v20 = vld [vmem:[%s3589_s9 + $0x10] sm:$0xff]  }
 0x899   :  { %v2784_v23 = vld [vmem:[%s3589_s9 + $0x20] sm:$0xff]  }
 0x89d   :  { %v935_v25 = vpop.f32.mrb[20].mxu0 }
 0x89e   :  { %v942_v26 = vadd.f32 %v935_v25, %v845_v16  ;;  %v2608_v28 = vpop.f32.mrb[21].mxu0  ;;  %v2780_v16 = vld [vmem:[%s3589_s9] sm:$0xff]   ;;  %v2785_v25 = vld [vmem:[%s3589_s9 + $0x28] sm:$0xff]  }
 0x89f   :  { %v938_v29 = vpop.f32.mrb[22].mxu0  ;;  %2619 = vmatpush3.bf16.msra.mxu0 %v2780_v16  ;;  %v997_v28 = vsub.s32 6, %v3048_v43 }
 0x8a0   :  { %v944_v30 = vadd.f32 %v942_v26, %v3028_v18  ;;  %v943_v31 = vadd.f32 %v938_v29, %v846_v22  ;;  %v2609_v32 = vpop.f32.mrb[23].mxu0  ;;  %2620 = vmatprep.subr.bf16.mxu0 %v2919_v2  ;;  %v2783_v22 = vld [vmem:[%s3589_s9 + $0x18] sm:$0xff]   ;;  %v2786_v26 = vld [vmem:[%s3589_s9 + $0x30] sm:$0xff]  }
 0x8a1   :  { %v998_v29 = vrot.slane %v3056_v45, %v997_v28 }
 0x8a2   :  { %v3234_v33 = vadd.f32 %v949_v27, %v944_v30  ;;  %v945_v34 = vadd.f32 %v943_v31, %v3030_v21 }
 0x8a3   :  { %2621 = vmatpush3.bf16.msra.mxu0 %v2781_v19 }
 0x8a4   :  { %v3237_v35 = vadd.f32 %v949_v27, %v945_v34  ;;  %v952_v36 = vsel %vm144_vm4, %v3234_v33, 0.0  ;;  %2622 = vmatprep.subr.bf16.mxu0 %v2919_v2  ;;  %v2787_v27 = vld [vmem:[%s3589_s9 + $0x38] sm:$0xff]  }
 0x8a5   :  { %953 = vadd.xlane.f32.xlu1 %v952_v36 }
 0x8a6   :  { %v955_v37 = vsel %vm144_vm4, %v3237_v35, 0.0 }
 0x8a7   :  { %956 = vadd.xlane.f32.xlu0 %v955_v37  ;;  %2623 = vmatpush3.bf16.msra.mxu0 %v2782_v20 }
 0x8a8   :  { %2624 = vmatprep.subr.bf16.mxu0 %v2919_v2 }
 0x8ab   :  { %2625 = vmatpush3.bf16.msra.mxu0 %v2783_v22 }
 0x8ac   :  { %2626 = vmatprep.subr.bf16.mxu0 %v2919_v2 }
 0x8af   :  { %2627 = vmatpush3.bf16.msra.mxu0 %v2784_v23 }
 0x8b0   :  { %2628 = vmatprep.subr.bf16.mxu0 %v2919_v2 }
 0x8b3   :  { %2629 = vmatpush3.bf16.msra.mxu0 %v2785_v25 }
 0x8b4   :  { %2630 = vmatprep.subr.bf16.mxu0 %v2919_v2 }
 0x8b7   :  { %2631 = vmatpush3.bf16.msra.mxu0 %v2786_v26 }
 0x8b8   :  { %2632 = vmatprep.subr.bf16.mxu0 %v2919_v2 }
 0x8bb   :  { %2633 = vmatpush3.bf16.msra.mxu0 %v2787_v27 }
 0x8bc   :  { %2664 = vmatprep.subr.bf16.mxu0 %v2919_v2 }
 0x932   :  { %v954_v38 = vpop.xlane.xlu1 %953 }
 0x933   :  { %v958_v39 = vmul.f32 0.03125, %v954_v38 }
 0x934   :  { %v957_v40 = vpop.xlane.xlu0 %956 }
 0x935   :  { %v960_v18 = vsub.f32 %v3234_v33, %v958_v39  ;;  %v959_v41 = vmul.f32 0.03125, %v957_v40 }
 0x937   :  { %v961_v42 = vsub.f32 %v3237_v35, %v959_v41  ;;  %v962_v46 = vmul.f32 %v960_v18, %v960_v18 }
 0x939   :  { %v964_v21 = vsel %vm144_vm4, %v962_v46, 0.0  ;;  %v963_v47 = vmul.f32 %v961_v42, %v961_v42 }
 0x93a   :  { %965 = vadd.xlane.f32.xlu1 %v964_v21 }
 0x93b   :  { %v967_v48 = vsel %vm144_vm4, %v963_v47, 0.0 }
 0x93c   :  { %968 = vadd.xlane.f32.xlu0 %v967_v48 }
 0x9c7   :  { %v966_v52 = vpop.xlane.xlu1 %965 }
 0x9c8   :  { %v970_v54 = vmul.f32 0.03125, %v966_v52 }
 0x9c9   :  { %v969_v55 = vpop.xlane.xlu0 %968 }
 0x9ca   :  { %v972_v57 = vadd.f32 1e-05, %v970_v54  ;;  %v971_v59 = vmul.f32 0.03125, %v969_v55 }
 0x9cc   :  { %2838 = vrsqrt.f32 %v972_v57  ;;  %v973_v61 = vadd.f32 1e-05, %v971_v59 }
 0x9ce   :  { %2840 = vrsqrt.f32 %v973_v61 }
 0x9d6   :  { %v2839_v5 = vpop.eup %2838 }
 0x9d7   :  { %v976_v6 = vmul.f32 %v2839_v5, %v960_v18  ;;  %v1092_v5 = vsub.s32 7, %v3048_v43 }
 0x9d8   :  { %v2841_v8 = vpop.eup %2840 }
 0x9d9   :  { %v982_v9 = vmul.f32 %v981_v0, %v976_v6  ;;  %v977_v10 = vmul.f32 %v2841_v8, %v961_v42  ;;  %v1093_v6 = vrot.slane %v3056_v45, %v1092_v5 }
 0x9db   :  { %v983_v11 = vmul.f32 %v981_v0, %v977_v10  ;;  %v988_v12 = vadd.f32 %v987_v3, %v982_v9 }
 0x9dd   :  { %v989_v13 = vadd.f32 %v987_v3, %v983_v11 }
 0x9df   :  { %v990_v14 = vpack.c.bf16 %v989_v13, %v988_v12 }
 0x9e1   :  { %2615 = vmatmul.mubr.msk.bf16.vlgmr.msra.gmra.mrb[32].mxu1 %vm144_vm4, %v990_v14 }
 0x9e2   :  { %2642 = vmatprep.mubr.msk.bf16.mxu1 %vm2920_vm0, %v2919_v2 }
 0xab4   :  { %v1048_v30 = vpop.f32.mrb[32].mxu1 }
 0xab5   :  { %v1049_v31 = vadd.f32 %v1048_v30, %v998_v29  ;;  %v2616_v32 = vpop.f32.mrb[33].mxu1  ;;  %v2788_v30 = vld [vmem:[%s3586_s6 + $0x10] sm:$0xff]  }
 0xab6   :  { %v1051_v34 = vpop.f32.mrb[34].mxu1  ;;  %2639 = vmatpush3.bf16.msra.mxu1 %v2788_v30 }
 0xab7   :  { %v1057_v36 = vmul.f32 0.044715, %v1049_v31  ;;  %v1052_v37 = vadd.f32 %v1051_v34, %v998_v29  ;;  %v2617_v38 = vpop.f32.mrb[35].mxu1  ;;  %v1055_v54 = vmul.f32 0.5, %v1049_v31  ;;  %2640 = vmatprep.subr.bf16.mxu1 %v2919_v2 }
 0xab9   :  { %v1059_v39 = vmul.f32 %v1057_v36, %v1049_v31  ;;  %v1058_v40 = vmul.f32 0.044715, %v1052_v37  ;;  %v1056_v55 = vmul.f32 0.5, %v1052_v37 }
 0xabb   :  { %v1061_v18 = vmul.f32 %v1059_v39, %v1049_v31  ;;  %v1060_v41 = vmul.f32 %v1058_v40, %v1052_v37  ;;  %v3333_v40 = vld [vmem:[%s3583_s3 + $0x8] sm:$0xff] }
 0xabd   :  { %v1063_v42 = vadd.f32 %v1061_v18, %v1049_v31  ;;  %v1062_v46 = vmul.f32 %v1060_v41, %v1052_v37  ;;  %v2789_v31 = vld [vmem:[%s3586_s6 + $0x18] sm:$0xff]   ;;  %v1214_v18 = vrot.slane %v3333_v40, %v3051_v44 }
 0xabe   :  { %2641 = vmatpush3.bf16.msra.mxu1 %v2789_v31 }
 0xabf   :  { %v1065_v21 = vmul.f32 0.7978846, %v1063_v42  ;;  %v1064_v47 = vadd.f32 %v1062_v46, %v1052_v37  ;;  %2646 = vmatprep.subr.bf16.mxu1 %v2919_v2 }
 0xac1   :  { %2842 = vtanh.f32 %v1065_v21  ;;  %v1066_v48 = vmul.f32 0.7978846, %v1064_v47 }
 0xac3   :  { %2844 = vtanh.f32 %v1066_v48  ;;  %v1220_v48 = vrot.slane %v3333_v40, %v3061_v49 }
 0xacb   :  { %v2843_v50 = vpop.eup %2842 }
 0xacc   :  { %v1069_v51 = vadd.f32 1.0, %v2843_v50 }
 0xacd   :  { %v2845_v52 = vpop.eup %2844 }
 0xace   :  { %v1070_v57 = vadd.f32 1.0, %v2845_v52  ;;  %v1071_v59 = vmul.f32 %v1069_v51, %v1055_v54 }
 0xad0   :  { %v1072_v61 = vmul.f32 %v1070_v57, %v1056_v55  ;;  %v1232_v55 = vrot.slane %v3333_v40, %v191_v58 }
 0xad2   :  { %v1073_v0 = vpack.c.bf16 %v1072_v61, %v1071_v59 }
 0xad4   :  { %2635 = vmatmul.mubr.bf16.vlgmr.msra.gmra.mrb[24].mxu0 %v1073_v0 }
 0xad5   :  { %2666 = vmatprep.mubr.msk.bf16.mxu0 %vm2920_vm0, %v2919_v2 }
 0xba7   :  { %v1176_v8 = vpop.f32.mrb[24].mxu0 }
 0xba8   :  { %v1177_v9 = vadd.f32 %v1176_v8, %v1093_v6  ;;  %v2636_v10 = vpop.f32.mrb[25].mxu0 }
 0xba9   :  { %v1179_v3 = vpop.f32.mrb[26].mxu0 }
 0xbaa   :  { %v3309_v11 = vadd.f32 %v1177_v9, %v3234_v33  ;;  %v1180_v12 = vadd.f32 %v1179_v3, %v1093_v6  ;;  %v2637_v13 = vpop.f32.mrb[27].mxu0 }
 0xbac   :  { %v3312_v14 = vadd.f32 %v1180_v12, %v3237_v35  ;;  %v1185_v16 = vsel %vm144_vm4, %v3309_v11, 0.0 }
 0xbad   :  { %1186 = vadd.xlane.f32.xlu1 %v1185_v16 }
 0xbae   :  { %v1188_v19 = vsel %vm144_vm4, %v3312_v14, 0.0 }
 0xbaf   :  { %1189 = vadd.xlane.f32.xlu0 %v1188_v19 }
 0xc3a   :  { %v1187_v45 = vpop.xlane.xlu1 %1186 }
 0xc3b   :  { %v1191_v20 = vmul.f32 0.03125, %v1187_v45 }
 0xc3c   :  { %v1190_v22 = vpop.xlane.xlu0 %1189 }
 0xc3d   :  { %v1193_v23 = vsub.f32 %v3309_v11, %v1191_v20  ;;  %v1192_v33 = vmul.f32 0.03125, %v1190_v22 }
 0xc3f   :  { %v1194_v25 = vsub.f32 %v3312_v14, %v1192_v33  ;;  %v1195_v26 = vmul.f32 %v1193_v23, %v1193_v23 }
 0xc41   :  { %v1197_v35 = vsel %vm144_vm4, %v1195_v26, 0.0  ;;  %v1196_v27 = vmul.f32 %v1194_v25, %v1194_v25 }
 0xc42   :  { %1198 = vadd.xlane.f32.xlu1 %v1197_v35 }
 0xc43   :  { %v1200_v29 = vsel %vm144_vm4, %v1196_v27, 0.0 }
 0xc44   :  { %1201 = vadd.xlane.f32.xlu0 %v1200_v29 }
 0xccf   :  { %v1199_v32 = vpop.xlane.xlu1 %1198 }
 0xcd0   :  { %v1203_v34 = vmul.f32 0.03125, %v1199_v32 }
 0xcd1   :  { %v1202_v36 = vpop.xlane.xlu0 %1201 }
 0xcd2   :  { %v1205_v37 = vadd.f32 1e-05, %v1203_v34  ;;  %v1204_v38 = vmul.f32 0.03125, %v1202_v36 }
 0xcd4   :  { %2846 = vrsqrt.f32 %v1205_v37  ;;  %v1206_v39 = vadd.f32 1e-05, %v1204_v38 }
 0xcd6   :  { %2848 = vrsqrt.f32 %v1206_v39 }
 0xcde   :  { %v2847_v41 = vpop.eup %2846 }
 0xcdf   :  { %v1209_v42 = vmul.f32 %v2847_v41, %v1193_v23 }
 0xce0   :  { %v2849_v46 = vpop.eup %2848 }
 0xce1   :  { %v1215_v21 = vmul.f32 %v1214_v18, %v1209_v42  ;;  %v1210_v47 = vmul.f32 %v2849_v46, %v1194_v25 }
 0xce3   :  { %v1216_v50 = vmul.f32 %v1214_v18, %v1210_v47  ;;  %v1221_v51 = vadd.f32 %v1220_v48, %v1215_v21 }
 0xce5   :  { %v1222_v52 = vadd.f32 %v1220_v48, %v1216_v50 }
 0xce7   :  { %v1223_v54 = vpack.c.bf16 %v1222_v52, %v1221_v51 }
 0xce9   :  { %2643 = vmatmul.mubr.msk.bf16.vlgmr.msra.gmra.mrb[36].mxu1 %vm144_vm4, %v1223_v54 }
 0xcea   :  { %2648 = vmatprep.mubr.msk.bf16.mxu1 %vm2920_vm0, %v2919_v2 }
 0xdbc   :  { %v1282_v57 = vpop.f32.mrb[36].mxu1 }
 0xdbd   :  { %v2644_v59 = vpop.f32.mrb[37].mxu1  ;;  %v1283_v0 = vadd.f32 %v1282_v57, %v1232_v55 }
 0xdbe   :  { %v1285_v61 = vpop.f32.mrb[38].mxu1 }
 0xdbf   :  { %v1286_v6 = vadd.f32 %v1285_v61, %v1232_v55  ;;  %v2645_v8 = vpop.f32.mrb[39].mxu1 }
 0xdc1   :  { %v3345_v9 = vpack.c.bf16 %v1286_v6, %v1283_v0 }
 0xdc3   :  { %1342 = vrot.lane.b32.xlu0 %v3345_v9, %s2922_s13  ;;  %1291 = vrot.lane.b32.xlu1 %v3345_v9, %s2924_s15 }
 0xdc7   :  { %1444 = vrot.lane.b32.xlu0 %v3345_v9, %s2926_s17  ;;  %1340 = vrot.lane.b32.xlu1 %v3345_v9, %s2923_s14 }
 0xdcb   :  { %1393 = vrot.lane.b32.xlu1 %v3345_v9, %s2925_s16 }
 0xdcf   :  { %1391 = vrot.lane.b32.xlu1 %v3345_v9, %s2921_s12 }
 0xdd3   :  { %1442 = vrot.lane.b32.xlu1 %v3345_v9, %s2927_s18 }
 0xe35   :  { %v1343_v58 = vpop.permute.xlu0 %1342  ;;  %v1292_v10 = vpop.permute.xlu1 %1291 }
 0xe36   :  { %v1297_v3 = vsel %vm253_vm5, %v1292_v10, 0  ;;  %v1348_v45 = vsel %vm253_vm5, %v1343_v58, 0 }
 0xe37   :  { %2647 = vmatpush3.bf16.xpose.msra.mxu1 %v1297_v3 }
 0xe38   :  { %2652 = vmatprep.subr.bf16.mxu1 %v2919_v2 }
 0xe39   :  { %v1445_v12 = vpop.permute.xlu0 %1444  ;;  %v1341_v13 = vpop.permute.xlu1 %1340 }
 0xe3a   :  { %v1450_v16 = vsel %vm253_vm5, %v1445_v12, 0 }
 0xe3b   :  { %2665 = vmatpush3.bf16.xpose.msra.mxu0 %v1450_v16 }
 0xe3c   :  { %2676 = vmatprep.subr.bf16.mxu0 %v2919_v2 }
 0xe3d   :  { %v1394_v19 = vpop.permute.xlu1 %1393 }
 0xe3e   :  { %2649 = vmatmul.mubr.msk.bf16.vlgmr.msra.gmra.mrb[40].mxu1 %vm253_vm5, %v3345_v9  ;;  %v1399_v23 = vsel %vm253_vm5, %v1394_v19, 0 }
 0xe3f   :  { %2653 = vmatpush3.bf16.xpose.msra.mxu1 %v1348_v45  ;;  %2654 = vmatprep.mubr.msk.bf16.mxu1 %vm2920_vm0, %v2919_v2 }
 0xe40   :  { %2658 = vmatprep.subr.bf16.mxu1 %v2919_v2 }
 0xe41   :  { %v1392_v20 = vpop.permute.xlu1 %1391 }
 0xe45   :  { %v1443_v22 = vpop.permute.xlu1 %1442 }
 0xe46   :  { %2655 = vmatmul.mubr.msk.bf16.vlgmr.msra.gmra.mrb[44].mxu1 %vm253_vm5, %v1341_v13  ;;  %2667 = vmatmul.mubr.msk.bf16.vlgmr.msra.gmra.mrb[28].mxu0 %vm253_vm5, %v1443_v22 }
 0xe47   :  { %2659 = vmatpush3.bf16.xpose.msra.mxu1 %v1399_v23  ;;  %2660 = vmatprep.mubr.msk.bf16.mxu1 %vm2920_vm0, %v2919_v2 }
 0xe48   :  { %2678 = vmatprep.mubr.msk.bf16.mxu0 %vm2920_vm0, %v2919_v2  ;;  %2670 = vmatprep.subr.bf16.mxu1 %v2919_v2 }
 0xe4e   :  { %2661 = vmatmul.mubr.msk.bf16.vlgmr.msra.gmra.mrb[48].mxu1 %vm253_vm5, %v1392_v20 }
 0xe4f   :  { %2672 = vmatprep.mubr.msk.bf16.mxu1 %vm2920_vm0, %v2919_v2 }
 0xf11   :  { %v1333_v33 = vpop.f32.mrb[40].mxu1 }
 0xf12   :  { %v2650_v25 = vpop.f32.mrb[41].mxu1  ;;  %v3386_v41 = vadd.f32 %v1333_v33, %v3130_v53 }
 0xf13   :  { %v1336_v26 = vpop.f32.mrb[42].mxu1 }
 0xf14   :  { %v2651_v35 = vpop.f32.mrb[43].mxu1  ;;  %v1501_v47 = vsel %vm462_vm6, %v3386_v41, -inf }
 0xf19   :  { %v1384_v27 = vpop.f32.mrb[44].mxu1  ;;  %v1486_v29 = vpop.f32.mrb[28].mxu0 }
 0xf1a   :  { %v1495_v30 = vadd.f32 %v1384_v27, %v3112_v15  ;;  %v2656_v31 = vpop.f32.mrb[45].mxu1  ;;  %v2668_v32 = vpop.f32.mrb[29].mxu0  ;;  %v1494_v15 = vadd.f32 %v1336_v26, %v3137_v56  ;;  %v1499_v54 = vadd.f32 %v1486_v29, %v3158_v4 }
 0xf1b   :  { %v1387_v34 = vpop.f32.mrb[46].mxu1  ;;  %v1489_v36 = vpop.f32.mrb[30].mxu0 }
 0xf1c   :  { %v1496_v37 = vadd.f32 %v1387_v34, %v3117_v17  ;;  %v2657_v38 = vpop.f32.mrb[47].mxu1  ;;  %v2669_v39 = vpop.f32.mrb[31].mxu0  ;;  %v1507_v18 = vsel %vm462_vm6, %v1495_v30, -inf  ;;  %v1504_v51 = vsel %vm462_vm6, %v1494_v15, -inf  ;;  %v1500_v55 = vadd.f32 %v1489_v36, %v3165_v7 }
 0xf1d   :  { %1508 = vmax.xlane.f32.xlu0 %v1507_v18  ;;  %v1519_v57 = vsel %vm462_vm6, %v1499_v54, -inf }
 0xf1e   :  { %v1510_v42 = vsel %vm462_vm6, %v1496_v37, -inf }
 0xf1f   :  { %1511 = vmax.xlane.f32.xlu1 %v1510_v42 }
 0xf21   :  { %v1435_v46 = vpop.f32.mrb[48].mxu1 }
 0xf22   :  { %v2662_v21 = vpop.f32.mrb[49].mxu1  ;;  %v1497_v50 = vadd.f32 %v1435_v46, %v3144_v60  ;;  %v1522_v60 = vsel %vm462_vm6, %v1500_v55, -inf }
 0xf23   :  { %1502 = vmax.xlane.f32.xlu1 %v1501_v47  ;;  %v1438_v17 = vpop.f32.mrb[50].mxu1 }
 0xf24   :  { %v2663_v48 = vpop.f32.mrb[51].mxu1  ;;  %v1498_v53 = vadd.f32 %v1438_v17, %v3151_v63  ;;  %v1513_v52 = vsel %vm462_vm6, %v1497_v50, -inf }
 0xf26   :  { %v1516_v56 = vsel %vm462_vm6, %v1498_v53, -inf }
 0xf27   :  { %1505 = vmax.xlane.f32.xlu1 %v1504_v51 }
 0xf2b   :  { %1514 = vmax.xlane.f32.xlu1 %v1513_v52 }
 0xf2f   :  { %1517 = vmax.xlane.f32.xlu1 %v1516_v56 }
 0xf33   :  { %1520 = vmax.xlane.f32.xlu1 %v1519_v57 }
 0xf37   :  { %1523 = vmax.xlane.f32.xlu1 %v1522_v60 }
 0xfaa   :  { %v1509_v59 = vpop.xlane.xlu0 %1508 }
 0xfab   :  { %v1527_v61 = vsub.f32 %v1495_v30, %v1509_v59 }
 0xfac   :  { %v1512_v0 = vpop.xlane.xlu1 %1511 }
 0xfad   :  { %v1537_v63 = vmul.f32 1.442695, %v1527_v61  ;;  %v1528_v6 = vsub.f32 %v1496_v37, %v1512_v0 }
 0xfaf   :  { %2850 = vpow2.f32 %v1537_v63  ;;  %v1539_v8 = vmul.f32 1.442695, %v1528_v6 }
 0xfb0   :  { %v1503_v58 = vpop.xlane.xlu1 %1502 }
 0xfb1   :  { %2852 = vpow2.f32 %v1539_v8  ;;  %v1525_v34 = vsub.f32 %v3386_v41, %v1503_v58 }
 0xfb3   :  { %v1533_v36 = vmul.f32 1.442695, %v1525_v34 }
 0xfb4   :  { %v1506_v4 = vpop.xlane.xlu1 %1505 }
 0xfb5   :  { %v1526_v10 = vsub.f32 %v1494_v15, %v1506_v4 }
 0xfb7   :  { %v1535_v3 = vmul.f32 1.442695, %v1526_v10  ;;  %v2387_v10 = vld [vmem:[%s3587_s7 + $0x14] sm:$0xf] }
 0xfb8   :  { %v1515_v12 = vpop.xlane.xlu1 %1514 }
 0xfb9   :  { %v2851_v7 = vpop.eup %2850  ;;  %2854 = vpow2.f32 %v1535_v3  ;;  %v1529_v39 = vsub.f32 %v1497_v50, %v1515_v12 }
 0xfba   :  { %v1555_v13 = vsel %vm462_vm6, %v2851_v7, 0.0 }
 0xfbb   :  { %v2853_v16 = vpop.eup %2852  ;;  %1556 = vadd.xlane.f32.xlu0 %v1555_v13  ;;  %v1541_v18 = vmul.f32 1.442695, %v1529_v39  ;;  %v1698_v13 = vsel %vm658_vm7, %v2387_v10, 0 }
 0xfbc   :  { %v1518_v19 = vpop.xlane.xlu1 %1517  ;;  %v1558_v45 = vsel %vm462_vm6, %v2853_v16, 0.0 }
 0xfbd   :  { %v1530_v42 = vsub.f32 %v1498_v53, %v1518_v19 }
 0xfbf   :  { %1559 = vadd.xlane.f32.xlu0 %v1558_v45  ;;  %v1543_v46 = vmul.f32 1.442695, %v1530_v42  ;;  %v2388_v42 = vld [vmem:[%s3587_s7 + $0x18] sm:$0xf] }
 0xfc0   :  { %v1521_v20 = vpop.xlane.xlu1 %1520 }
 0xfc1   :  { %v1531_v22 = vsub.f32 %v1499_v54, %v1521_v20 }
 0xfc3   :  { %v3403_v23 = vpop.eup %2854  ;;  %v1545_v33 = vmul.f32 1.442695, %v1531_v22 }
 0xfc4   :  { %v1524_v25 = vpop.xlane.xlu1 %1523  ;;  %v1552_v26 = vsel %vm462_vm6, %v3403_v23, 0.0 }
 0xfc5   :  { %2856 = vpow2.f32 %v1545_v33  ;;  %v1532_v35 = vsub.f32 %v1500_v55, %v1524_v25  ;;  %1553 = vadd.xlane.f32.xlu1 %v1552_v26 }
 0xfc7   :  { %v1547_v27 = vmul.f32 1.442695, %v1532_v35 }
 0xfc9   :  { %2858 = vpow2.f32 %v1547_v27 }
 0xfca   :  { %2860 = vpow2.f32 %v1533_v36 }
 0xfcb   :  { %2862 = vpow2.f32 %v1541_v18 }
 0xfcc   :  { %2864 = vpow2.f32 %v1543_v46  ;;  %v1840_v46 = vsel %vm658_vm7, %v2388_v42, 0 }
 0xfcf   :  { %v2857_v29 = vpop.eup %2856 }
 0xfd0   :  { %v1567_v30 = vsel %vm462_vm6, %v2857_v29, 0.0 }
 0xfd1   :  { %1568 = vadd.xlane.f32.xlu1 %v1567_v30 }
 0xfd3   :  { %v2859_v31 = vpop.eup %2858 }
 0xfd4   :  { %v1570_v32 = vsel %vm462_vm6, %v2859_v31, 0.0  ;;  %v2861_v37 = vpop.eup %2860 }
 0xfd5   :  { %1646 = vrot.lane.b32.xlu0 %v3345_v9, %s2928_s0  ;;  %1571 = vadd.xlane.f32.xlu1 %v1570_v32  ;;  %v1549_v38 = vsel %vm462_vm6, %v2861_v37, 0.0  ;;  %v3415_v15 = vpop.eup %2862 }
 0xfd6   :  { %v1561_v41 = vsel %vm462_vm6, %v3415_v15, 0.0  ;;  %v3419_v21 = vpop.eup %2864 }
 0xfd7   :  { %v1564_v47 = vsel %vm462_vm6, %v3419_v21, 0.0 }
 0xfe6   :  { %1598 = vrot.lane.b32.xlu1 %v3345_v9, %s2929_s20 }
 0xff4   :  { %1550 = vadd.xlane.f32.xlu0 %v1549_v38 }
0x100a   :  { %1788 = vrot.lane.b32.xlu0 %v3345_v9, %s2930_s2  ;;  %1562 = vadd.xlane.f32.xlu1 %v1561_v41 }
0x100e   :  { %1565 = vadd.xlane.f32.xlu1 %v1564_v47 }
0x101f   :  { %1885 = vrot.lane.b32.xlu1 %v3345_v9, %s2931_s21 }
0x1048   :  { %v1557_v17 = vpop.xlane.xlu0 %1556 }
0x1049   :  { %2866 = vrcp.f32 %v1557_v17 }
0x104c   :  { %v1560_v48 = vpop.xlane.xlu0 %1559 }
0x104d   :  { %2868 = vrcp.f32 %v1560_v48  ;;  %v2389_v48 = vld [vmem:[%s3587_s7 + $0x1c] sm:$0xf] }
0x1050   :  { %v1647_v50 = vpop.permute.xlu0 %1646 }
0x1051   :  { %2677 = vmatpush3.bf16.msra.mxu0 %v1647_v50 }
0x1052   :  { %2688 = vmatprep.subr.bf16.mxu0 %v2919_v2  ;;  %v1554_v56 = vpop.xlane.xlu1 %1553 }
0x1053   :  { %v2867_v51 = vpop.eup %2866 }
0x1054   :  { %v1583_v52 = vmul.f32 %v2867_v51, %v2851_v7 }
0x1057   :  { %v2869_v53 = vpop.eup %2868 }
0x1058   :  { %v1584_v54 = vmul.f32 %v2869_v53, %v2853_v16  ;;  %v2386_v16 = vld [vmem:[%s3587_s7 + $0x10] sm:$0xf] }
0x1059   :  { %v1745_v19 = vsel %vm658_vm7, %v2386_v16, 0 }
0x105a   :  { %v1590_v55 = vpack.c.bf16 %v1584_v54, %v1583_v52  ;;  %v1937_v54 = vsel %vm658_vm7, %v2389_v48, 0  ;;  %v2019_v48 = vrot.slane %v3333_v40, %v980_v62  ;;  %v2792_v62 = vld [vmem:[%s3589_s9 + $0x40] sm:$0xff]  }
0x105c   :  { %2679 = vmatmul.mubr.msk.bf16.vlgmr.msra.gmra.mrb[32].mxu0 %vm462_vm6, %v1590_v55 }
0x105d   :  { %2690 = vmatprep.mubr.msk.bf16.mxu0 %vm2920_vm0, %v2919_v2  ;;  %2689 = vmatpush3.bf16.msra.mxu0 %v1745_v19  ;;  %v1987_v19 = vrot.slane %v3333_v40, %v948_v24 }
0x105e   :  { %v1569_v9 = vpop.xlane.xlu1 %1568  ;;  %2700 = vmatprep.subr.bf16.mxu0 %v2919_v2 }
0x105f   :  { %2870 = vrcp.f32 %v1569_v9 }
0x1062   :  { %v1572_v57 = vpop.xlane.xlu1 %1571 }
0x1063   :  { %2872 = vrcp.f32 %v1572_v57 }
0x1064   :  { %2874 = vrcp.f32 %v1554_v56 }
0x1066   :  { %v1599_v60 = vpop.permute.xlu1 %1598 }
0x1067   :  { %2671 = vmatpush3.bf16.msra.mxu1 %v1599_v60 }
0x1068   :  { %2682 = vmatprep.subr.bf16.mxu1 %v2919_v2 }
0x1069   :  { %v2871_v59 = vpop.eup %2870 }
0x106a   :  { %v1587_v0 = vmul.f32 %v2871_v59, %v2857_v29 }
0x106d   :  { %v2873_v61 = vpop.eup %2872 }
0x106e   :  { %v1588_v63 = vmul.f32 %v2873_v61, %v2859_v31  ;;  %v2875_v58 = vpop.eup %2874 }
0x106f   :  { %v1582_v3 = vmul.f32 %v2875_v58, %v3403_v23 }
0x1070   :  { %v1592_v6 = vpack.c.bf16 %v1588_v63, %v1587_v0 }
0x1081   :  { %v1551_v8 = vpop.xlane.xlu0 %1550 }
0x1082   :  { %2876 = vrcp.f32 %v1551_v8 }
0x1085   :  { %v1789_v27 = vpop.permute.xlu0 %1788 }
0x108c   :  { %v2877_v4 = vpop.eup %2876 }
0x108d   :  { %v1581_v12 = vmul.f32 %v2877_v4, %v2861_v37 }
0x108f   :  { %v1589_v7 = vpack.c.bf16 %v1582_v3, %v1581_v12 }
0x1091   :  { %2673 = vmatmul.mubr.msk.bf16.vlgmr.msra.gmra.mrb[52].mxu1 %vm462_vm6, %v1589_v7 }
0x1092   :  { %2683 = vmatpush3.bf16.msra.mxu1 %v1698_v13  ;;  %2684 = vmatprep.mubr.msk.bf16.mxu1 %vm2920_vm0, %v2919_v2 }
0x1093   :  { %2694 = vmatprep.subr.bf16.mxu1 %v2919_v2 }
0x1097   :  { %v1563_v45 = vpop.xlane.xlu1 %1562 }
0x109b   :  { %v1566_v20 = vpop.xlane.xlu1 %1565 }
0x109c   :  { %2878 = vrcp.f32 %v1566_v20 }
0x109d   :  { %2880 = vrcp.f32 %v1563_v45 }
0x109f   :  { %v1886_v34 = vpop.permute.xlu1 %1885 }
0x10a6   :  { %v2879_v35 = vpop.eup %2878 }
0x10a7   :  { %v2881_v29 = vpop.eup %2880  ;;  %v1586_v30 = vmul.f32 %v2879_v35, %v3419_v21 }
0x10a8   :  { %v1585_v31 = vmul.f32 %v2881_v29, %v3415_v15 }
0x10aa   :  { %v1591_v32 = vpack.c.bf16 %v1586_v30, %v1585_v31 }
0x112f   :  { %v1686_v22 = vpop.f32.mrb[32].mxu0 }
0x1130   :  { %v2680_v23 = vpop.f32.mrb[33].mxu0 }
0x1131   :  { %v1689_v33 = vpop.f32.mrb[34].mxu0 }
0x1132   :  { %v1693_v25 = vpack.c.bf16 %v1689_v33, %v1686_v22  ;;  %v2681_v26 = vpop.f32.mrb[35].mxu0 }
0x1134   :  { %2685 = vmatmul.mubr.msk.bf16.vlgmr.msra.gmra.mrb[56].mxu1 %vm253_vm5, %v1693_v25 }
0x1135   :  { %2695 = vmatpush3.bf16.msra.mxu1 %v1789_v27  ;;  %2696 = vmatprep.mubr.msk.bf16.mxu1 %vm2920_vm0, %v2919_v2 }
0x1136   :  { %2706 = vmatprep.subr.bf16.mxu1 %v2919_v2 }
0x113c   :  { %2697 = vmatmul.mubr.msk.bf16.vlgmr.msra.gmra.mrb[60].mxu1 %vm462_vm6, %v1591_v32 }
0x113d   :  { %2707 = vmatpush3.bf16.msra.mxu1 %v1886_v34  ;;  %2708 = vmatprep.mubr.msk.bf16.mxu1 %vm2920_vm0, %v2919_v2 }
0x113e   :  { %2718 = vmatprep.subr.bf16.mxu1 %v2919_v2 }
0x1144   :  { %2709 = vmatmul.mubr.msk.bf16.vlgmr.msra.gmra.mrb[64].mxu1 %vm462_vm6, %v1592_v6 }
0x1145   :  { %2722 = vmatprep.mubr.msk.bf16.mxu1 %vm2920_vm0, %v2919_v2 }
0x1164   :  { %v1638_v36 = vpop.f32.mrb[52].mxu1 }
0x1165   :  { %v2674_v37 = vpop.f32.mrb[53].mxu1 }
0x1166   :  { %v1641_v38 = vpop.f32.mrb[54].mxu1 }
0x1167   :  { %v1645_v39 = vpack.c.bf16 %v1641_v38, %v1638_v36  ;;  %v2675_v18 = vpop.f32.mrb[55].mxu1 }
0x1168   :  { %v2791_v18 = vld [vmem:[%s3588_s8 + $0x18] sm:$0xff]  }
0x1169   :  { %2691 = vmatmul.mubr.msk.bf16.vlgmr.msra.gmra.mrb[36].mxu0 %vm253_vm5, %v1645_v39  ;;  %v2790_v39 = vld [vmem:[%s3588_s8 + $0x10] sm:$0xff]  }
0x116a   :  { %2702 = vmatprep.mubr.msk.bf16.mxu0 %vm2920_vm0, %v2919_v2  ;;  %2701 = vmatpush3.bf16.msra.mxu0 %v1840_v46 }
0x116b   :  { %2712 = vmatprep.subr.bf16.mxu0 %v2919_v2  ;;  %2719 = vmatpush3.bf16.msra.mxu1 %v2790_v39 }
0x116c   :  { %2720 = vmatprep.subr.bf16.mxu1 %v2919_v2 }
0x116f   :  { %2721 = vmatpush3.bf16.msra.mxu1 %v2791_v18 }
0x1170   :  { %2746 = vmatprep.subr.bf16.mxu1 %v2919_v2 }
0x1207   :  { %v1734_v15 = vpop.f32.mrb[56].mxu1 }
0x1208   :  { %v2686_v41 = vpop.f32.mrb[57].mxu1 }
0x1209   :  { %v1737_v21 = vpop.f32.mrb[58].mxu1 }
0x120a   :  { %v2687_v47 = vpop.f32.mrb[59].mxu1 }
0x120f   :  { %v1828_v17 = vpop.f32.mrb[60].mxu1 }
0x1210   :  { %v2698_v50 = vpop.f32.mrb[61].mxu1 }
0x1211   :  { %v1831_v51 = vpop.f32.mrb[62].mxu1 }
0x1212   :  { %v1835_v53 = vpack.c.bf16 %v1831_v51, %v1828_v17  ;;  %v2699_v52 = vpop.f32.mrb[63].mxu1 }
0x1214   :  { %2703 = vmatmul.mubr.msk.bf16.vlgmr.msra.gmra.mrb[40].mxu0 %vm253_vm5, %v1835_v53 }
0x1215   :  { %2713 = vmatpush3.bf16.msra.mxu0 %v1937_v54  ;;  %2714 = vmatprep.mubr.msk.bf16.mxu0 %vm2920_vm0, %v2919_v2  ;;  %v2025_v54 = vrot.slane %v3333_v40, %v986_v1  ;;  %v2793_v1 = vld [vmem:[%s3589_s9 + $0x48] sm:$0xff]  }
0x1216   :  { %2726 = vmatprep.subr.bf16.mxu0 %v2919_v2 }
0x1217   :  { %v1925_v56 = vpop.f32.mrb[64].mxu1 }
0x1218   :  { %v2710_v55 = vpop.f32.mrb[65].mxu1 }
0x1219   :  { %v1928_v9 = vpop.f32.mrb[66].mxu1 }
0x121a   :  { %v1932_v57 = vpack.c.bf16 %v1928_v9, %v1925_v56  ;;  %v2711_v60 = vpop.f32.mrb[67].mxu1 }
0x121b   :  { %v2794_v60 = vld [vmem:[%s3589_s9 + $0x50] sm:$0xff]  }
0x121c   :  { %2715 = vmatmul.mubr.msk.bf16.vlgmr.msra.gmra.mrb[44].mxu0 %vm253_vm5, %v1932_v57 }
0x121d   :  { %2742 = vmatprep.mubr.msk.bf16.mxu0 %vm2920_vm0, %v2919_v2  ;;  %2727 = vmatpush3.bf16.msra.mxu0 %v2792_v62 }
0x121e   :  { %2728 = vmatprep.subr.bf16.mxu0 %v2919_v2 }
0x1221   :  { %2729 = vmatpush3.bf16.msra.mxu0 %v2793_v1 }
0x1222   :  { %2730 = vmatprep.subr.bf16.mxu0 %v2919_v2 }
0x1225   :  { %2731 = vmatpush3.bf16.msra.mxu0 %v2794_v60  ;;  %v39_v60 = vld [vmem:[%s3583_s3 + $0x10] sm:$0x3] }
0x1226   :  { %2732 = vmatprep.subr.bf16.mxu0 %v2919_v2 }
0x123c   :  { %v1781_v59 = vpop.f32.mrb[36].mxu0 }
0x123d   :  { %v1782_v61 = vadd.f32 %v1781_v59, %v1734_v15  ;;  %v2692_v0 = vpop.f32.mrb[37].mxu0  ;;  %v2795_v59 = vld [vmem:[%s3589_s9 + $0x58] sm:$0xff]  }
0x123e   :  { %v1784_v63 = vpop.f32.mrb[38].mxu0  ;;  %2733 = vmatpush3.bf16.msra.mxu0 %v2795_v59  ;;  %v2797_v0 = vld [vmem:[%s3589_s9 + $0x68] sm:$0xff]   ;;  %v2254_v59 = vrot.slane %v39_v60, %v3051_v44 }
0x123f   :  { %v1785_v6 = vadd.f32 %v1784_v63, %v1737_v21  ;;  %v2693_v8 = vpop.f32.mrb[39].mxu0  ;;  %2734 = vmatprep.subr.bf16.mxu0 %v2919_v2  ;;  %v2798_v63 = vld [vmem:[%s3589_s9 + $0x70] sm:$0xff]  }
0x1240   :  { %v2037_v8 = vrot.slane %v3333_v40, %v997_v28 }
0x12e7   :  { %v1876_v58 = vpop.f32.mrb[40].mxu0 }
0x12e8   :  { %v1883_v4 = vadd.f32 %v1876_v58, %v1782_v61  ;;  %v2704_v10 = vpop.f32.mrb[41].mxu0  ;;  %v2796_v61 = vld [vmem:[%s3589_s9 + $0x60] sm:$0xff]  }
0x12e9   :  { %v1879_v3 = vpop.f32.mrb[42].mxu0  ;;  %2735 = vmatpush3.bf16.msra.mxu0 %v2796_v61 }
0x12ea   :  { %v1884_v12 = vadd.f32 %v1879_v3, %v1785_v6  ;;  %v2705_v7 = vpop.f32.mrb[43].mxu0  ;;  %2736 = vmatprep.subr.bf16.mxu0 %v2919_v2  ;;  %v2799_v6 = vld [vmem:[%s3589_s9 + $0x78] sm:$0xff]  }
0x12ed   :  { %2737 = vmatpush3.bf16.msra.mxu0 %v2797_v0 }
0x12ee   :  { %2738 = vmatprep.subr.bf16.mxu0 %v2919_v2 }
0x12ef   :  { %v1973_v13 = vpop.f32.mrb[44].mxu0 }
0x12f0   :  { %v1980_v16 = vadd.f32 %v1973_v13, %v1883_v4  ;;  %v2716_v45 = vpop.f32.mrb[45].mxu0 }
0x12f1   :  { %v1976_v20 = vpop.f32.mrb[46].mxu0  ;;  %2739 = vmatpush3.bf16.msra.mxu0 %v2798_v63 }
0x12f2   :  { %v1982_v22 = vadd.f32 %v1980_v16, %v3309_v11  ;;  %v1981_v23 = vadd.f32 %v1976_v20, %v1884_v12  ;;  %v2717_v33 = vpop.f32.mrb[47].mxu0  ;;  %2740 = vmatprep.subr.bf16.mxu0 %v2919_v2 }
0x12f4   :  { %v3482_v25 = vadd.f32 %v1987_v19, %v1982_v22  ;;  %v1983_v26 = vadd.f32 %v1981_v23, %v3312_v14 }
0x12f5   :  { %2741 = vmatpush3.bf16.msra.mxu0 %v2799_v6 }
0x12f6   :  { %v3485_v35 = vadd.f32 %v1987_v19, %v1983_v26  ;;  %v1990_v27 = vsel %vm144_vm4, %v3482_v25, 0.0 }
0x12f7   :  { %1991 = vadd.xlane.f32.xlu1 %v1990_v27 }
0x12f8   :  { %v1993_v29 = vsel %vm144_vm4, %v3485_v35, 0.0 }
0x12f9   :  { %1994 = vadd.xlane.f32.xlu0 %v1993_v29 }
0x1384   :  { %v1992_v24 = vpop.xlane.xlu1 %1991 }
0x1385   :  { %v1996_v30 = vmul.f32 0.03125, %v1992_v24 }
0x1386   :  { %v1995_v31 = vpop.xlane.xlu0 %1994 }
0x1387   :  { %v1998_v11 = vsub.f32 %v3482_v25, %v1996_v30  ;;  %v1997_v32 = vmul.f32 0.03125, %v1995_v31 }
0x1389   :  { %v1999_v34 = vsub.f32 %v3485_v35, %v1997_v32  ;;  %v2000_v36 = vmul.f32 %v1998_v11, %v1998_v11 }
0x138b   :  { %v2002_v14 = vsel %vm144_vm4, %v2000_v36, 0.0  ;;  %v2001_v37 = vmul.f32 %v1999_v34, %v1999_v34 }
0x138c   :  { %2003 = vadd.xlane.f32.xlu1 %v2002_v14  ;;  %v2133_v14 = vrot.slane %v3333_v40, %v1092_v5 }
0x138d   :  { %v2005_v38 = vsel %vm144_vm4, %v2001_v37, 0.0 }
0x1390   :  { %2006 = vadd.xlane.f32.xlu1 %v2005_v38 }
0x1419   :  { %v2004_v42 = vpop.xlane.xlu1 %2003 }
0x141a   :  { %v2008_v46 = vmul.f32 0.03125, %v2004_v42 }
0x141c   :  { %v2010_v15 = vadd.f32 1e-05, %v2008_v46 }
0x141d   :  { %v2007_v41 = vpop.xlane.xlu1 %2006 }
0x141e   :  { %2882 = vrsqrt.f32 %v2010_v15  ;;  %v2009_v21 = vmul.f32 0.03125, %v2007_v41 }
0x1420   :  { %v2011_v47 = vadd.f32 1e-05, %v2009_v21 }
0x1422   :  { %2884 = vrsqrt.f32 %v2011_v47 }
0x1428   :  { %v2883_v17 = vpop.eup %2882 }
0x1429   :  { %v2014_v50 = vmul.f32 %v2883_v17, %v1998_v11 }
0x142b   :  { %v2020_v53 = vmul.f32 %v2019_v48, %v2014_v50 }
0x142c   :  { %v2885_v51 = vpop.eup %2884 }
0x142d   :  { %v2015_v52 = vmul.f32 %v2885_v51, %v1999_v34  ;;  %v2026_v55 = vadd.f32 %v2025_v54, %v2020_v53 }
0x142f   :  { %v2021_v56 = vmul.f32 %v2019_v48, %v2015_v52 }
0x1431   :  { %v2027_v9 = vadd.f32 %v2025_v54, %v2021_v56  ;;  %v2801_v54 = vld [vmem:[%s3585_s5 + $0x8] sm:$0xff]  }
0x1433   :  { %v2028_v57 = vpack.c.bf16 %v2027_v9, %v2026_v55 }
0x1435   :  { %2723 = vmatmul.mubr.msk.bf16.vlgmr.msra.gmra.mrb[68].mxu1 %vm144_vm4, %v2028_v57 }
0x1436   :  { %2750 = vmatprep.mubr.msk.bf16.mxu1 %vm2920_vm0, %v2919_v2 }
0x1508   :  { %v2087_v58 = vpop.f32.mrb[68].mxu1 }
0x1509   :  { %v2088_v4 = vadd.f32 %v2087_v58, %v2037_v8  ;;  %v2724_v10 = vpop.f32.mrb[69].mxu1 }
0x150a   :  { %v2090_v3 = vpop.f32.mrb[70].mxu1 }
0x150b   :  { %v2096_v12 = vmul.f32 0.044715, %v2088_v4  ;;  %v2091_v7 = vadd.f32 %v2090_v3, %v2037_v8  ;;  %v2725_v13 = vpop.f32.mrb[71].mxu1  ;;  %v2094_v30 = vmul.f32 0.5, %v2088_v4  ;;  %v2260_v8 = vrot.slane %v39_v60, %v3061_v49 }
0x150d   :  { %v2098_v16 = vmul.f32 %v2096_v12, %v2088_v4  ;;  %v2097_v19 = vmul.f32 0.044715, %v2091_v7  ;;  %v2095_v31 = vmul.f32 0.5, %v2091_v7 }
0x150f   :  { %v2100_v45 = vmul.f32 %v2098_v16, %v2088_v4  ;;  %v2099_v20 = vmul.f32 %v2097_v19, %v2091_v7 }
0x1511   :  { %v2102_v22 = vadd.f32 %v2100_v45, %v2088_v4  ;;  %v2101_v23 = vmul.f32 %v2099_v20, %v2091_v7 }
0x1513   :  { %v2104_v33 = vmul.f32 0.7978846, %v2102_v22  ;;  %v2103_v26 = vadd.f32 %v2101_v23, %v2091_v7 }
0x1515   :  { %2886 = vtanh.f32 %v2104_v33  ;;  %v2105_v27 = vmul.f32 0.7978846, %v2103_v26 }
0x1517   :  { %2888 = vtanh.f32 %v2105_v27 }
0x151f   :  { %v2887_v29 = vpop.eup %2886 }
0x1520   :  { %v2108_v28 = vadd.f32 1.0, %v2887_v29 }
0x1521   :  { %v2889_v24 = vpop.eup %2888 }
0x1522   :  { %v2109_v11 = vadd.f32 1.0, %v2889_v24  ;;  %v2110_v32 = vmul.f32 %v2108_v28, %v2094_v30 }
0x1524   :  { %v2111_v34 = vmul.f32 %v2109_v11, %v2095_v31 }
0x1526   :  { %v2112_v36 = vpack.c.bf16 %v2111_v34, %v2110_v32 }
0x1528   :  { %2743 = vmatmul.mubr.bf16.vlgmr.msra.gmra.mrb[48].mxu0 %v2112_v36 }
0x15fb   :  { %v2216_v37 = vpop.f32.mrb[48].mxu0 }
0x15fc   :  { %v2217_v38 = vadd.f32 %v2216_v37, %v2133_v14  ;;  %v2744_v39 = vpop.f32.mrb[49].mxu0 }
0x15fd   :  { %v2219_v18 = vpop.f32.mrb[50].mxu0 }
0x15fe   :  { %v2220_v42 = vadd.f32 %v2219_v18, %v2133_v14  ;;  %v2745_v46 = vpop.f32.mrb[51].mxu0  ;;  %v2223_v15 = vadd.f32 %v2217_v38, %v3482_v25 }
0x1600   :  { %v2224_v41 = vadd.f32 %v2220_v42, %v3485_v35  ;;  %v2225_v21 = vsel %vm144_vm4, %v2223_v15, 0.0  ;;  %v2800_v35 = vld [vmem:[%s3585_s5] sm:$0xff]   ;;  %s2932_s5 = smov [#allocation2]  }
0x1601   :  { %2226 = vadd.xlane.f32.xlu0 %v2225_v21  ;;  %2747 = vmatpush3.bf16.msra.mxu1 %v2800_v35  ;;  %s2331_s17 = sshll.u32 %s2932_s5, 4  ;;  %s2332_s17 = int_to_ptr.vmem [resolvable:$true] %s2331_s17 }
0x1602   :  { %v2228_v47 = vsel %vm144_vm4, %v2224_v41, 0.0  ;;  %2748 = vmatprep.subr.bf16.mxu1 %v2919_v2  ;;  %s2894_s3 = scalar_lea.vmem %s2332_s17, 256  ;;  %p2899_p1 = scmp.lt.s32.totalorder %s2332_s17, %s2332_s17 }
0x1603   :  { %2229 = vadd.xlane.f32.xlu1 %v2228_v47  ;;  %p2895_p0 = scmp.ne.s32.totalorder %s2332_s17, %s2894_s3  ;;  %p2900_p2 = scmp.lt.s32.totalorder %s2894_s3, %s2894_s3 }
0x1605   :  { %2749 = vmatpush3.bf16.msra.mxu1 %v2801_v54  ;;  %p2901_p3 = por %p2900_p2, %p2899_p1 }
0x1607   :  { %p2902_p4 = pnand %p2901_p3, %p2895_p0 }
0x168e   :  { %v2227_v17 = vpop.xlane.xlu0 %2226 }
0x168f   :  { %v2231_v43 = vmul.f32 0.03125, %v2227_v17 }
0x1690   :  { %v2230_v48 = vpop.xlane.xlu1 %2229 }
0x1691   :  { %v2233_v5 = vsub.f32 %v2223_v15, %v2231_v43  ;;  %v2232_v40 = vmul.f32 0.03125, %v2230_v48 }
0x1693   :  { %v2234_v50 = vsub.f32 %v2224_v41, %v2232_v40  ;;  %v2235_v51 = vmul.f32 %v2233_v5, %v2233_v5 }
0x1695   :  { %v2237_v53 = vsel %vm144_vm4, %v2235_v51, 0.0  ;;  %v2236_v52 = vmul.f32 %v2234_v50, %v2234_v50 }
0x1696   :  { %2238 = vadd.xlane.f32.xlu0 %v2237_v53 }
0x1697   :  { %v2240_v25 = vsel %vm144_vm4, %v2236_v52, 0.0 }
0x1698   :  { %2241 = vadd.xlane.f32.xlu1 %v2240_v25 }
0x1723   :  { %v2239_v56 = vpop.xlane.xlu0 %2238 }
0x1724   :  { %v2243_v55 = vmul.f32 0.03125, %v2239_v56 }
0x1725   :  { %v2242_v9 = vpop.xlane.xlu1 %2241 }
0x1726   :  { %v2245_v57 = vadd.f32 1e-05, %v2243_v55  ;;  %v2244_v62 = vmul.f32 0.03125, %v2242_v9 }
0x1728   :  { %2890 = vrsqrt.f32 %v2245_v57  ;;  %v2246_v1 = vadd.f32 1e-05, %v2244_v62 }
0x172a   :  { %2892 = vrsqrt.f32 %v2246_v1 }
0x1732   :  { %v2891_v61 = vpop.eup %2890 }
0x1733   :  { %v2249_v0 = vmul.f32 %v2891_v61, %v2233_v5 }
0x1734   :  { %v2893_v63 = vpop.eup %2892 }
0x1735   :  { %v2255_v6 = vmul.f32 %v2254_v59, %v2249_v0  ;;  %v2250_v2 = vmul.f32 %v2893_v63, %v2234_v50 }
0x1737   :  { %v2256_v58 = vmul.f32 %v2254_v59, %v2250_v2  ;;  %v2261_v4 = vadd.f32 %v2260_v8, %v2255_v6 }
0x1739   :  { %v2262_v10 = vadd.f32 %v2260_v8, %v2256_v58 }
0x173b   :  { %v2263_v3 = vpack.c.bf16 %v2262_v10, %v2261_v4 }
0x173d   :  { %2751 = vmatmul.mubr.msk.bf16.vlgmr.msra.gmra.mrb[72].mxu1 %vm144_vm4, %v2263_v3 }
0x1810   :  { %v2317_v12 = vpop.f32.mrb[72].mxu1 }
0x1811   :  { %2324 = vst [vmem:[#allocation2] sm:$0xff] %v2317_v12  ;;  %v2752_v7 = vpop.f32.mrb[73].mxu1 }
0x1812   :  { %v2320_v44 = vpop.f32.mrb[74].mxu1 }
0x1813   :  { %2325 = vst [vmem:[#allocation2 + $0x8] sm:$0xff] %v2320_v44  ;;  %v2753_v13 = vpop.f32.mrb[75].mxu1 }
0x1814   :  { %2905 = shalt.err (!%p2902_p4)
}
0x1815   :  { %s2906_s0 = scalar_lea.hbm %s3590_s10, 256 }
0x1816   :  { %p2907_p5 = scmp.ne.s32.totalorder %s3590_s10, %s2906_s0  ;;  %p2910_p6 = scmp.lt.u32.totalorder %s2906_s0, %s3590_s10 }
0x1818   :  { %p2912_p7 = pnand %p2910_p6, %p2907_p5 }
0x181a   :  { %2915 = shalt.err (!%p2912_p7)
}
0x181b   :  { %s2933_s28 = smov 128   ;;  %s2934_s29 = smov 8  }
0x181c   :  { %2337 = dma.vmem_to_hbm [thread:$0]  %s2332_s17, 256, %s3590_s10, [#allocation3], %s2933_s28, %s2933_s28, %s2934_s29  }
0x181d   :  { %2916 = dma.done.wait [#allocation3], 256  }
0x181e   :  { %2917 = vsyncadd [#allocation3], 4294967040 }
0x181f   :  { %2341 = vsyncpa [#allocation3], 1 }

</bundles_post_ra>
